<compile_context>
chip_gen: v5e
topology: v5e:2x2
jax: 0.10.0
libtpu: 0.0.40
codegen_flags: <defaults>
</compile_context>

<pallas_src>
import jax
import jax.numpy as jnp
from jax.experimental import pallas as pl
from jax.experimental.pallas import tpu as pltpu


def _round_up(x, m):
    return (x + m - 1) // m * m


def _pick_tile(dim, candidates):
    for c in candidates:
        if dim >= c and dim % c == 0:
            return c
    return dim


# ---------------------------------------------------------------------------
# Kernel 1: serial LSTM recurrence.  Emits h_t; no vocab projection inside.
# ---------------------------------------------------------------------------
def lstm_recurrent_kernel(gx_ref, zb_ref, whh_ref, c0_ref, h_out_ref,
                          h_sc, c_sc):
    """One grid step == one chunk of T_CHUNK time steps.

    gx_ref   : (T, Bp, 4*nhp)  precomputed word_embed @ w_ih_x for this chunk
    zb_ref   : (Bp, 4*nhp)     z @ w_ih_z + bias (constant over time)
    whh_ref  : (nhp, 4*nhp)    hidden->hidden weight (gate-padded, transposed)
    c0_ref   : (Bp, nhp)       initial cell state (z @ w_trans)
    h_out_ref: (T, Bp, nhp)    hidden states emitted for this chunk
    h_sc,c_sc: (Bp, nhp)       recurrent state, persistent across grid steps
    """
    # c_init = trans_linear(z); h_init = tanh(c_init)
    @pl.when(pl.program_id(0) == 0)
    def _():
        c0 = c0_ref[...]
        c_sc[...] = c0
        h_sc[...] = jnp.tanh(c0)

    nhp = h_sc.shape[-1]
    t_chunk = gx_ref.shape[0]
    zb = zb_ref[...]       # hoisted loads (constant over the chunk)
    whh = whh_ref[...]

    def step(t, carry):
        del carry
        h = h_sc[...]
        c = c_sc[...]
        gates = gx_ref[t] + zb + jnp.dot(
            h, whh, preferred_element_type=jnp.float32)          # (Bp, 4*nhp)
        # Gate slices are lane-aligned (nhp is a multiple of 128).
        i_g = jax.nn.sigmoid(gates[:, 0 * nhp:1 * nhp])
        f_g = jax.nn.sigmoid(gates[:, 1 * nhp:2 * nhp])
        g_g = jnp.tanh(gates[:, 2 * nhp:3 * nhp])
        o_g = jax.nn.sigmoid(gates[:, 3 * nhp:4 * nhp])
        c_new = f_g * c + i_g * g_g
        h_new = o_g * jnp.tanh(c_new)
        c_sc[...] = c_new
        h_sc[...] = h_new
        h_out_ref[t] = h_new
        return 0

    jax.lax.fori_loop(0, t_chunk, step, 0, unroll=True)


# ---------------------------------------------------------------------------
# Kernel 2: standard tiled matmul (used for the hoisted vocab projection).
# ---------------------------------------------------------------------------
def matmul_kernel(a_ref, b_ref, o_ref, acc_ref):
    @pl.when(pl.program_id(2) == 0)
    def _():
        acc_ref[...] = jnp.zeros_like(acc_ref)
    acc_ref[...] += jnp.dot(a_ref[...], b_ref[...],
                            preferred_element_type=jnp.float32)
    @pl.when(pl.program_id(2) == pl.num_programs(2) - 1)
    def _():
        o_ref[...] = acc_ref[...].astype(o_ref.dtype)


def _pallas_matmul(a, b, out_dtype=jnp.float32):
    M, K = a.shape
    K2, N = b.shape
    assert K == K2
    tm = _pick_tile(M, (256, 128))
    tn = _pick_tile(N, (512, 256, 128))
    tk = K if K <= 1024 else _pick_tile(K, (1024, 512, 256, 128))
    grid = (M // tm, N // tn, K // tk)
    return pl.pallas_call(
        matmul_kernel,
        out_shape=jax.ShapeDtypeStruct((M, N), out_dtype),
        grid_spec=pltpu.PrefetchScalarGridSpec(
            num_scalar_prefetch=0,
            grid=grid,
            in_specs=[pl.BlockSpec((tm, tk), lambda i, j, k: (i, k)),
                      pl.BlockSpec((tk, tn), lambda i, j, k: (k, j))],
            out_specs=pl.BlockSpec((tm, tn), lambda i, j, k: (i, j)),
            scratch_shapes=[pltpu.VMEM((tm, tn), jnp.float32)]),
        compiler_params=pltpu.CompilerParams(
            dimension_semantics=("parallel", "parallel", "arbitrary"),
            vmem_limit_bytes=64 * 1024 * 1024),
    )(a, b)


# ---------------------------------------------------------------------------
# Forward wrapper
# ---------------------------------------------------------------------------
def lstm_decoder_forward(inputs, z, params, *, t_chunk=16):
    """Pallas implementation of LSTMDecoder.forward (n_sample == 1)."""
    seq_len, batch = inputs.shape
    n_sample = z.shape[0]
    assert n_sample == 1, "n_sample != 1 raises NotImplementedError in reference"
    nz = z.shape[-1]
    emb = params["embed"]            # (V, ni)
    ni = emb.shape[1]
    nh = params["w_hh"].shape[0]
    V = params["w_pred"].shape[1]

    f32 = jnp.float32

    # Lane-aligned padded sizes.
    nhp = _round_up(nh, 128)
    Vp = _round_up(V, 128)
    Bp = _round_up(batch, 8)
    t_chunk = min(t_chunk, seq_len)
    Sp = _round_up(seq_len, t_chunk)

    def gate_pad(w):
        # (..., 4*nh) -> (..., 4*nhp); each gate block zero-padded to nhp lanes
        parts = []
        for k in range(4):
            g = w[..., k * nh:(k + 1) * nh]
            pad = [(0, 0)] * (g.ndim - 1) + [(0, nhp - nh)]
            parts.append(jnp.pad(g, pad))
        return jnp.concatenate(parts, axis=-1)

    # TODO(synk): for production on v6e/v7x store these weights as bfloat16
    # (feed bf16 to the MXU, keep f32 accumulation & elementwise math); kept
    # f32 here so the correctness check vs the f32 reference stays tight.
    w_ih_x = gate_pad(params["w_ih"][:ni])                              # (ni, 4*nhp)
    w_ih_z = gate_pad(params["w_ih"][ni:])                              # (nz, 4*nhp)
    b_p = gate_pad(params["b"])                                         # (1, 4*nhp)
    w_hh_p = gate_pad(jnp.pad(params["w_hh"], ((0, nhp - nh), (0, 0)))) # (nhp, 4*nhp)
    w_tr_p = jnp.pad(params["w_trans"], ((0, 0), (0, nhp - nh)))        # (nz, nhp)
    w_pr_p = jnp.pad(params["w_pred"], ((0, nhp - nh), (0, Vp - V)))    # (nhp, Vp)

    # ---- plain-JAX glue: embedding + batched input-gate precompute --------
    word_embed = jnp.take(emb, inputs, axis=0)                          # (S, B, ni)
    word_embed = jnp.pad(word_embed,
                         ((0, Sp - seq_len), (0, Bp - batch), (0, 0)))
    # Input-gate contribution has no recurrent dependency -> one big matmul.
    gx = jnp.einsum("sbi,ig->sbg", word_embed, w_ih_x)                  # (Sp, Bp, 4*nhp)

    # z is constant over time: fold z @ w_ih[ni:] + bias into a single
    # per-batch vector added inside the kernel (no z broadcast / concat).
    z2 = z.reshape(batch * n_sample, nz)
    z2p = jnp.pad(z2, ((0, Bp - batch), (0, 0)))                        # (Bp, nz)
    zb = z2p @ w_ih_z + b_p                                             # (Bp, 4*nhp)
    c0 = z2p @ w_tr_p                                                   # (Bp, nhp)

    # ---- Pallas kernel 1: serial recurrence, emits h_t ---------------------
    n_chunks = Sp // t_chunk
    h_seq = pl.pallas_call(
        lstm_recurrent_kernel,
        out_shape=jax.ShapeDtypeStruct((Sp, Bp, nhp), f32),
        grid_spec=pltpu.PrefetchScalarGridSpec(
            num_scalar_prefetch=0,
            grid=(n_chunks,),
            in_specs=[
                pl.BlockSpec((t_chunk, Bp, 4 * nhp), lambda s: (s, 0, 0)),
                pl.BlockSpec((Bp, 4 * nhp), lambda s: (0, 0)),
                pl.BlockSpec((nhp, 4 * nhp), lambda s: (0, 0)),
                pl.BlockSpec((Bp, nhp), lambda s: (0, 0)),
            ],
            out_specs=pl.BlockSpec((t_chunk, Bp, nhp), lambda s: (s, 0, 0)),
            scratch_shapes=[pltpu.VMEM((Bp, nhp), f32),   # h state
                            pltpu.VMEM((Bp, nhp), f32)],  # c state
        ),
        compiler_params=pltpu.CompilerParams(
            dimension_semantics=("arbitrary",),  # recurrence must stay in order
            vmem_limit_bytes=64 * 1024 * 1024),
    )(gx, zb, w_hh_p, c0)

    # ---- Pallas kernel 2: hoisted vocab projection, full MXU occupancy -----
    h_flat = h_seq.reshape(Sp * Bp, nhp)
    Mp = _round_up(Sp * Bp, 128)
    if Mp != Sp * Bp:
        h_flat = jnp.pad(h_flat, ((0, Mp - Sp * Bp), (0, 0)))
    logits_p = _pallas_matmul(h_flat, w_pr_p)                           # (Mp, Vp)

    logits = logits_p[:Sp * Bp].reshape(Sp, Bp, Vp)[:seq_len, :batch, :V]
    # output_logits.view(-1, batch_size, len(vocab))
    return logits.reshape(-1, batch, V)


# ---------------------------------------------------------------------------
# Pure-JAX reference (mirrors PyTorch LSTMDecoder.forward, eval mode)
# ---------------------------------------------------------------------------
def reference_forward(inputs, z, params):
    seq_len, batch = inputs.shape
    nz = z.shape[-1]
    emb = params["embed"]
    V = params["w_pred"].shape[1]
    nh = params["w_hh"].shape[0]

    word_embed = jnp.take(emb, inputs, axis=0)
    z2 = z.reshape(batch, nz)
    z_exp = jnp.broadcast_to(z2[None], (seq_len, batch, nz))
    x = jnp.concatenate([word_embed, z_exp], axis=-1)

    c0 = z2 @ params["w_trans"]
    h0 = jnp.tanh(c0)

    def step(carry, x_t):
        h, c = carry
        gates = x_t @ params["w_ih"] + h @ params["w_hh"] + params["b"][0]
        i = jax.nn.sigmoid(gates[:, :nh])
        f = jax.nn.sigmoid(gates[:, nh:2 * nh])
        g = jnp.tanh(gates[:, 2 * nh:3 * nh])
        o = jax.nn.sigmoid(gates[:, 3 * nh:4 * nh])
        c = f * c + i * g
        h = o * jnp.tanh(c)
        return (h, c), h @ params["w_pred"]

    _, outs = jax.lax.scan(step, (h0, c0), x)
    return outs.reshape(-1, batch, V)


def init_params(key, vocab_size, ni, nz, nh):
    """Deterministic synthetic parameter init (shapes from LSTMDecoder.__init__).

    Weights stored pre-transposed for x @ W layouts.
    LSTM gate ordering matches PyTorch: (input, forget, cell, output).
    """
    ks = jax.random.split(key, 6)
    s = 0.05
    return {
        "embed":   s * jax.random.normal(ks[0], (vocab_size, ni), jnp.float32),
        "w_trans": s * jax.random.normal(ks[1], (nz, nh), jnp.float32),
        "w_ih":    s * jax.random.normal(ks[2], (ni + nz, 4 * nh), jnp.float32),
        "w_hh":    s * jax.random.normal(ks[3], (nh, 4 * nh), jnp.float32),
        "b":       s * jax.random.normal(ks[4], (1, 4 * nh), jnp.float32),
        "w_pred":  s * jax.random.normal(ks[5], (nh, vocab_size), jnp.float32),
    }


if __name__ == "__main__":
    vocab_size, ni, nz, nh = 64, 32, 16, 32
    seq_len, batch = 8, 8

    key = jax.random.PRNGKey(0)
    k_param, k_tok, k_z = jax.random.split(key, 3)

    params = init_params(k_param, vocab_size, ni, nz, nh)
    inputs = jax.random.randint(k_tok, (seq_len, batch), 0, vocab_size,
                                dtype=jnp.int32)
    z = jax.random.normal(k_z, (1, batch, nz), jnp.float32)

    logits = lstm_decoder_forward(inputs, z, params)
    logits = jax.block_until_ready(logits)

    ref = jax.block_until_ready(reference_forward(inputs, z, params))
    assert logits.shape == (seq_len, batch, vocab_size)
    assert jnp.allclose(logits, ref, rtol=1e-4, atol=1e-4), "mismatch vs reference"

    print("KERNEL_OK")
</pallas_src>

<mosaic_0001>
module attributes {stable_mosaic.version = 11 : i64} {
  func.func @lstm_recurrent_kernel(%arg0: i32, %arg1: memref<8x8x512xf32, #tpu.memory_space<vmem>>, %arg2: memref<8x512xf32, #tpu.memory_space<vmem>>, %arg3: memref<128x512xf32, #tpu.memory_space<vmem>>, %arg4: memref<8x128xf32, #tpu.memory_space<vmem>>, %arg5: memref<8x8x128xf32, #tpu.memory_space<vmem>>, %arg6: memref<8x128xf32, #tpu.memory_space<vmem>>, %arg7: memref<8x128xf32, #tpu.memory_space<vmem>>) attributes {dimension_semantics = [#tpu.dimension_semantics<arbitrary>], iteration_bounds = array<i64: 1>, scalar_prefetch = 0 : i64, scratch_operands = 2 : i64, tpu.core_type = #tpu.core_type<tc>, window_params = [{transform_indices = @transform_0, window_bounds = array<i64: 8, 8, 512>}, {pipeline_mode = #tpu.pipeline_mode<synchronous>, transform_indices = @transform_1, window_bounds = array<i64: 8, 512>}, {pipeline_mode = #tpu.pipeline_mode<synchronous>, transform_indices = @transform_2, window_bounds = array<i64: 128, 512>}, {pipeline_mode = #tpu.pipeline_mode<synchronous>, transform_indices = @transform_3, window_bounds = array<i64: 8, 128>}, {transform_indices = @transform_4, window_bounds = array<i64: 8, 8, 128>}]} {
    %c0_i32 = arith.constant 0 : i32
    %0 = arith.cmpi eq, %arg0, %c0_i32 : i32
    %1 = arith.extui %0 : i1 to i32
    %c0_i32_0 = arith.constant 0 : i32
    %2 = arith.cmpi ne, %1, %c0_i32_0 : i32
    scf.if %2 {
      %c0_132 = arith.constant 0 : index
      %c0_133 = arith.constant 0 : index
      %317 = vector.load %arg4[%c0_132, %c0_133] : memref<8x128xf32, #tpu.memory_space<vmem>>, vector<8x128xf32>
      %c0_134 = arith.constant 0 : index
      %c0_135 = arith.constant 0 : index
      %318 = vector.load %arg7[%c0_134, %c0_135] : memref<8x128xf32, #tpu.memory_space<vmem>>, vector<8x128xf32>
      tpu.vector_store %arg7[%c0_134, %c0_135], %317 {strides = array<i32>} : memref<8x128xf32, #tpu.memory_space<vmem>>, vector<8x128xf32>,
      %319 = math.tanh %317 : vector<8x128xf32>
      %c0_136 = arith.constant 0 : index
      %c0_137 = arith.constant 0 : index
      %320 = vector.load %arg6[%c0_136, %c0_137] : memref<8x128xf32, #tpu.memory_space<vmem>>, vector<8x128xf32>
      tpu.vector_store %arg6[%c0_136, %c0_137], %319 {strides = array<i32>} : memref<8x128xf32, #tpu.memory_space<vmem>>, vector<8x128xf32>,
    } else {
    }
    %c0 = arith.constant 0 : index
    %c0_1 = arith.constant 0 : index
    %3 = vector.load %arg2[%c0, %c0_1] : memref<8x512xf32, #tpu.memory_space<vmem>>, vector<8x512xf32>
    %c0_2 = arith.constant 0 : index
    %c0_3 = arith.constant 0 : index
    %4 = vector.load %arg3[%c0_2, %c0_3] : memref<128x512xf32, #tpu.memory_space<vmem>>, vector<128x512xf32>
    %c0_i32_4 = arith.constant 0 : i32
    %c0_5 = arith.constant 0 : index
    %c0_6 = arith.constant 0 : index
    %5 = vector.load %arg6[%c0_5, %c0_6] : memref<8x128xf32, #tpu.memory_space<vmem>>, vector<8x128xf32>
    %c0_7 = arith.constant 0 : index
    %c0_8 = arith.constant 0 : index
    %6 = vector.load %arg7[%c0_7, %c0_8] : memref<8x128xf32, #tpu.memory_space<vmem>>, vector<8x128xf32>
    %7 = arith.index_cast %c0_i32_4 : i32 to index
    %c0_9 = arith.constant 0 : index
    %c0_10 = arith.constant 0 : index
    %8 = vector.load %arg1[%7, %c0_9, %c0_10] : memref<8x8x512xf32, #tpu.memory_space<vmem>>, vector<1x8x512xf32>
    %9 = vector.shape_cast %8 : vector<1x8x512xf32> to vector<8x512xf32>
    %10 = arith.addf %9, %3 : vector<8x512xf32>
    %cst = arith.constant dense<0.000000e+00> : vector<8x512xf32>
    %11 = tpu.matmul %5, %4, %cst {dimension_numbers = #tpu.dot_dimension_numbers<[1], [0], [0], [1], [0, 0, 1, 1], [], []>} : vector<8x128xf32>, vector<128x512xf32>, vector<8x512xf32> -> vector<8x512xf32>
    %12 = arith.addf %10, %11 : vector<8x512xf32>
    %13 = vector.extract_strided_slice %12 {offsets = [0, 0], sizes = [8, 128], strides = [1, 1]} : vector<8x512xf32> to vector<8x128xf32>
    %14 = arith.negf %13 : vector<8x128xf32>
    %15 = math.exp %14 : vector<8x128xf32>
    %cst_11 = arith.constant 1.000000e+00 : f32
    %16 = vector.broadcast %cst_11 : f32 to vector<8x128xf32>
    %17 = arith.addf %16, %15 : vector<8x128xf32>
    %18 = arith.divf %16, %17 : vector<8x128xf32>
    %19 = vector.extract_strided_slice %12 {offsets = [0, 128], sizes = [8, 128], strides = [1, 1]} : vector<8x512xf32> to vector<8x128xf32>
    %20 = arith.negf %19 : vector<8x128xf32>
    %21 = math.exp %20 : vector<8x128xf32>
    %cst_12 = arith.constant 1.000000e+00 : f32
    %22 = vector.broadcast %cst_12 : f32 to vector<8x128xf32>
    %23 = arith.addf %22, %21 : vector<8x128xf32>
    %24 = arith.divf %22, %23 : vector<8x128xf32>
    %25 = vector.extract_strided_slice %12 {offsets = [0, 256], sizes = [8, 128], strides = [1, 1]} : vector<8x512xf32> to vector<8x128xf32>
    %26 = math.tanh %25 : vector<8x128xf32>
    %27 = vector.extract_strided_slice %12 {offsets = [0, 384], sizes = [8, 128], strides = [1, 1]} : vector<8x512xf32> to vector<8x128xf32>
    %28 = arith.negf %27 : vector<8x128xf32>
    %29 = math.exp %28 : vector<8x128xf32>
    %cst_13 = arith.constant 1.000000e+00 : f32
    %30 = vector.broadcast %cst_13 : f32 to vector<8x128xf32>
    %31 = arith.addf %30, %29 : vector<8x128xf32>
    %32 = arith.divf %30, %31 : vector<8x128xf32>
    %33 = arith.mulf %24, %6 : vector<8x128xf32>
    %34 = arith.mulf %18, %26 : vector<8x128xf32>
    %35 = arith.addf %33, %34 : vector<8x128xf32>
    %36 = math.tanh %35 : vector<8x128xf32>
    %37 = arith.mulf %32, %36 : vector<8x128xf32>
    %c0_14 = arith.constant 0 : index
    %c0_15 = arith.constant 0 : index
    %38 = vector.load %arg7[%c0_14, %c0_15] : memref<8x128xf32, #tpu.memory_space<vmem>>, vector<8x128xf32>
    tpu.vector_store %arg7[%c0_14, %c0_15], %35 {strides = array<i32>} : memref<8x128xf32, #tpu.memory_space<vmem>>, vector<8x128xf32>,
    %c0_16 = arith.constant 0 : index
    %c0_17 = arith.constant 0 : index
    %39 = vector.load %arg6[%c0_16, %c0_17] : memref<8x128xf32, #tpu.memory_space<vmem>>, vector<8x128xf32>
    tpu.vector_store %arg6[%c0_16, %c0_17], %37 {strides = array<i32>} : memref<8x128xf32, #tpu.memory_space<vmem>>, vector<8x128xf32>,
    %40 = arith.index_cast %c0_i32_4 : i32 to index
    %c0_18 = arith.constant 0 : index
    %c0_19 = arith.constant 0 : index
    %41 = vector.load %arg5[%40, %c0_18, %c0_19] : memref<8x8x128xf32, #tpu.memory_space<vmem>>, vector<1x8x128xf32>
    %42 = vector.shape_cast %41 : vector<1x8x128xf32> to vector<8x128xf32>
    %43 = vector.shape_cast %37 : vector<8x128xf32> to vector<1x8x128xf32>
    tpu.vector_store %arg5[%40, %c0_18, %c0_19], %43 {strides = array<i32>} : memref<8x8x128xf32, #tpu.memory_space<vmem>>, vector<1x8x128xf32>,
    %c1_i32 = arith.constant 1 : i32
    %c0_20 = arith.constant 0 : index
    %c0_21 = arith.constant 0 : index
    %44 = vector.load %arg6[%c0_20, %c0_21] : memref<8x128xf32, #tpu.memory_space<vmem>>, vector<8x128xf32>
    %c0_22 = arith.constant 0 : index
    %c0_23 = arith.constant 0 : index
    %45 = vector.load %arg7[%c0_22, %c0_23] : memref<8x128xf32, #tpu.memory_space<vmem>>, vector<8x128xf32>
    %46 = arith.index_cast %c1_i32 : i32 to index
    %c0_24 = arith.constant 0 : index
    %c0_25 = arith.constant 0 : index
    %47 = vector.load %arg1[%46, %c0_24, %c0_25] : memref<8x8x512xf32, #tpu.memory_space<vmem>>, vector<1x8x512xf32>
    %48 = vector.shape_cast %47 : vector<1x8x512xf32> to vector<8x512xf32>
    %49 = arith.addf %48, %3 : vector<8x512xf32>
    %cst_26 = arith.constant dense<0.000000e+00> : vector<8x512xf32>
    %50 = tpu.matmul %44, %4, %cst_26 {dimension_numbers = #tpu.dot_dimension_numbers<[1], [0], [0], [1], [0, 0, 1, 1], [], []>} : vector<8x128xf32>, vector<128x512xf32>, vector<8x512xf32> -> vector<8x512xf32>
    %51 = arith.addf %49, %50 : vector<8x512xf32>
    %52 = vector.extract_strided_slice %51 {offsets = [0, 0], sizes = [8, 128], strides = [1, 1]} : vector<8x512xf32> to vector<8x128xf32>
    %53 = arith.negf %52 : vector<8x128xf32>
    %54 = math.exp %53 : vector<8x128xf32>
    %cst_27 = arith.constant 1.000000e+00 : f32
    %55 = vector.broadcast %cst_27 : f32 to vector<8x128xf32>
    %56 = arith.addf %55, %54 : vector<8x128xf32>
    %57 = arith.divf %55, %56 : vector<8x128xf32>
    %58 = vector.extract_strided_slice %51 {offsets = [0, 128], sizes = [8, 128], strides = [1, 1]} : vector<8x512xf32> to vector<8x128xf32>
    %59 = arith.negf %58 : vector<8x128xf32>
    %60 = math.exp %59 : vector<8x128xf32>
    %cst_28 = arith.constant 1.000000e+00 : f32
    %61 = vector.broadcast %cst_28 : f32 to vector<8x128xf32>
    %62 = arith.addf %61, %60 : vector<8x128xf32>
    %63 = arith.divf %61, %62 : vector<8x128xf32>
    %64 = vector.extract_strided_slice %51 {offsets = [0, 256], sizes = [8, 128], strides = [1, 1]} : vector<8x512xf32> to vector<8x128xf32>
    %65 = math.tanh %64 : vector<8x128xf32>
    %66 = vector.extract_strided_slice %51 {offsets = [0, 384], sizes = [8, 128], strides = [1, 1]} : vector<8x512xf32> to vector<8x128xf32>
    %67 = arith.negf %66 : vector<8x128xf32>
    %68 = math.exp %67 : vector<8x128xf32>
    %cst_29 = arith.constant 1.000000e+00 : f32
    %69 = vector.broadcast %cst_29 : f32 to vector<8x128xf32>
    %70 = arith.addf %69, %68 : vector<8x128xf32>
    %71 = arith.divf %69, %70 : vector<8x128xf32>
    %72 = arith.mulf %63, %45 : vector<8x128xf32>
    %73 = arith.mulf %57, %65 : vector<8x128xf32>
    %74 = arith.addf %72, %73 : vector<8x128xf32>
    %75 = math.tanh %74 : vector<8x128xf32>
    %76 = arith.mulf %71, %75 : vector<8x128xf32>
    %c0_30 = arith.constant 0 : index
    %c0_31 = arith.constant 0 : index
    %77 = vector.load %arg7[%c0_30, %c0_31] : memref<8x128xf32, #tpu.memory_space<vmem>>, vector<8x128xf32>
    tpu.vector_store %arg7[%c0_30, %c0_31], %74 {strides = array<i32>} : memref<8x128xf32, #tpu.memory_space<vmem>>, vector<8x128xf32>,
    %c0_32 = arith.constant 0 : index
    %c0_33 = arith.constant 0 : index
    %78 = vector.load %arg6[%c0_32, %c0_33] : memref<8x128xf32, #tpu.memory_space<vmem>>, vector<8x128xf32>
    tpu.vector_store %arg6[%c0_32, %c0_33], %76 {strides = array<i32>} : memref<8x128xf32, #tpu.memory_space<vmem>>, vector<8x128xf32>,
    %79 = arith.index_cast %c1_i32 : i32 to index
    %c0_34 = arith.constant 0 : index
    %c0_35 = arith.constant 0 : index
    %80 = vector.load %arg5[%79, %c0_34, %c0_35] : memref<8x8x128xf32, #tpu.memory_space<vmem>>, vector<1x8x128xf32>
    %81 = vector.shape_cast %80 : vector<1x8x128xf32> to vector<8x128xf32>
    %82 = vector.shape_cast %76 : vector<8x128xf32> to vector<1x8x128xf32>
    tpu.vector_store %arg5[%79, %c0_34, %c0_35], %82 {strides = array<i32>} : memref<8x8x128xf32, #tpu.memory_space<vmem>>, vector<1x8x128xf32>,
    %c2_i32 = arith.constant 2 : i32
    %c0_36 = arith.constant 0 : index
    %c0_37 = arith.constant 0 : index
    %83 = vector.load %arg6[%c0_36, %c0_37] : memref<8x128xf32, #tpu.memory_space<vmem>>, vector<8x128xf32>
    %c0_38 = arith.constant 0 : index
    %c0_39 = arith.constant 0 : index
    %84 = vector.load %arg7[%c0_38, %c0_39] : memref<8x128xf32, #tpu.memory_space<vmem>>, vector<8x128xf32>
    %85 = arith.index_cast %c2_i32 : i32 to index
    %c0_40 = arith.constant 0 : index
    %c0_41 = arith.constant 0 : index
    %86 = vector.load %arg1[%85, %c0_40, %c0_41] : memref<8x8x512xf32, #tpu.memory_space<vmem>>, vector<1x8x512xf32>
    %87 = vector.shape_cast %86 : vector<1x8x512xf32> to vector<8x512xf32>
    %88 = arith.addf %87, %3 : vector<8x512xf32>
    %cst_42 = arith.constant dense<0.000000e+00> : vector<8x512xf32>
    %89 = tpu.matmul %83, %4, %cst_42 {dimension_numbers = #tpu.dot_dimension_numbers<[1], [0], [0], [1], [0, 0, 1, 1], [], []>} : vector<8x128xf32>, vector<128x512xf32>, vector<8x512xf32> -> vector<8x512xf32>
    %90 = arith.addf %88, %89 : vector<8x512xf32>
    %91 = vector.extract_strided_slice %90 {offsets = [0, 0], sizes = [8, 128], strides = [1, 1]} : vector<8x512xf32> to vector<8x128xf32>
    %92 = arith.negf %91 : vector<8x128xf32>
    %93 = math.exp %92 : vector<8x128xf32>
    %cst_43 = arith.constant 1.000000e+00 : f32
    %94 = vector.broadcast %cst_43 : f32 to vector<8x128xf32>
    %95 = arith.addf %94, %93 : vector<8x128xf32>
    %96 = arith.divf %94, %95 : vector<8x128xf32>
    %97 = vector.extract_strided_slice %90 {offsets = [0, 128], sizes = [8, 128], strides = [1, 1]} : vector<8x512xf32> to vector<8x128xf32>
    %98 = arith.negf %97 : vector<8x128xf32>
    %99 = math.exp %98 : vector<8x128xf32>
    %cst_44 = arith.constant 1.000000e+00 : f32
    %100 = vector.broadcast %cst_44 : f32 to vector<8x128xf32>
    %101 = arith.addf %100, %99 : vector<8x128xf32>
    %102 = arith.divf %100, %101 : vector<8x128xf32>
    %103 = vector.extract_strided_slice %90 {offsets = [0, 256], sizes = [8, 128], strides = [1, 1]} : vector<8x512xf32> to vector<8x128xf32>
    %104 = math.tanh %103 : vector<8x128xf32>
    %105 = vector.extract_strided_slice %90 {offsets = [0, 384], sizes = [8, 128], strides = [1, 1]} : vector<8x512xf32> to vector<8x128xf32>
    %106 = arith.negf %105 : vector<8x128xf32>
    %107 = math.exp %106 : vector<8x128xf32>
    %cst_45 = arith.constant 1.000000e+00 : f32
    %108 = vector.broadcast %cst_45 : f32 to vector<8x128xf32>
    %109 = arith.addf %108, %107 : vector<8x128xf32>
    %110 = arith.divf %108, %109 : vector<8x128xf32>
    %111 = arith.mulf %102, %84 : vector<8x128xf32>
    %112 = arith.mulf %96, %104 : vector<8x128xf32>
    %113 = arith.addf %111, %112 : vector<8x128xf32>
    %114 = math.tanh %113 : vector<8x128xf32>
    %115 = arith.mulf %110, %114 : vector<8x128xf32>
    %c0_46 = arith.constant 0 : index
    %c0_47 = arith.constant 0 : index
    %116 = vector.load %arg7[%c0_46, %c0_47] : memref<8x128xf32, #tpu.memory_space<vmem>>, vector<8x128xf32>
    tpu.vector_store %arg7[%c0_46, %c0_47], %113 {strides = array<i32>} : memref<8x128xf32, #tpu.memory_space<vmem>>, vector<8x128xf32>,
    %c0_48 = arith.constant 0 : index
    %c0_49 = arith.constant 0 : index
    %117 = vector.load %arg6[%c0_48, %c0_49] : memref<8x128xf32, #tpu.memory_space<vmem>>, vector<8x128xf32>
    tpu.vector_store %arg6[%c0_48, %c0_49], %115 {strides = array<i32>} : memref<8x128xf32, #tpu.memory_space<vmem>>, vector<8x128xf32>,
    %118 = arith.index_cast %c2_i32 : i32 to index
    %c0_50 = arith.constant 0 : index
    %c0_51 = arith.constant 0 : index
    %119 = vector.load %arg5[%118, %c0_50, %c0_51] : memref<8x8x128xf32, #tpu.memory_space<vmem>>, vector<1x8x128xf32>
    %120 = vector.shape_cast %119 : vector<1x8x128xf32> to vector<8x128xf32>
    %121 = vector.shape_cast %115 : vector<8x128xf32> to vector<1x8x128xf32>
    tpu.vector_store %arg5[%118, %c0_50, %c0_51], %121 {strides = array<i32>} : memref<8x8x128xf32, #tpu.memory_space<vmem>>, vector<1x8x128xf32>,
    %c3_i32 = arith.constant 3 : i32
    %c0_52 = arith.constant 0 : index
    %c0_53 = arith.constant 0 : index
    %122 = vector.load %arg6[%c0_52, %c0_53] : memref<8x128xf32, #tpu.memory_space<vmem>>, vector<8x128xf32>
    %c0_54 = arith.constant 0 : index
    %c0_55 = arith.constant 0 : index
    %123 = vector.load %arg7[%c0_54, %c0_55] : memref<8x128xf32, #tpu.memory_space<vmem>>, vector<8x128xf32>
    %124 = arith.index_cast %c3_i32 : i32 to index
    %c0_56 = arith.constant 0 : index
    %c0_57 = arith.constant 0 : index
    %125 = vector.load %arg1[%124, %c0_56, %c0_57] : memref<8x8x512xf32, #tpu.memory_space<vmem>>, vector<1x8x512xf32>
    %126 = vector.shape_cast %125 : vector<1x8x512xf32> to vector<8x512xf32>
    %127 = arith.addf %126, %3 : vector<8x512xf32>
    %cst_58 = arith.constant dense<0.000000e+00> : vector<8x512xf32>
    %128 = tpu.matmul %122, %4, %cst_58 {dimension_numbers = #tpu.dot_dimension_numbers<[1], [0], [0], [1], [0, 0, 1, 1], [], []>} : vector<8x128xf32>, vector<128x512xf32>, vector<8x512xf32> -> vector<8x512xf32>
    %129 = arith.addf %127, %128 : vector<8x512xf32>
    %130 = vector.extract_strided_slice %129 {offsets = [0, 0], sizes = [8, 128], strides = [1, 1]} : vector<8x512xf32> to vector<8x128xf32>
    %131 = arith.negf %130 : vector<8x128xf32>
    %132 = math.exp %131 : vector<8x128xf32>
    %cst_59 = arith.constant 1.000000e+00 : f32
    %133 = vector.broadcast %cst_59 : f32 to vector<8x128xf32>
    %134 = arith.addf %133, %132 : vector<8x128xf32>
    %135 = arith.divf %133, %134 : vector<8x128xf32>
    %136 = vector.extract_strided_slice %129 {offsets = [0, 128], sizes = [8, 128], strides = [1, 1]} : vector<8x512xf32> to vector<8x128xf32>
    %137 = arith.negf %136 : vector<8x128xf32>
    %138 = math.exp %137 : vector<8x128xf32>
    %cst_60 = arith.constant 1.000000e+00 : f32
    %139 = vector.broadcast %cst_60 : f32 to vector<8x128xf32>
    %140 = arith.addf %139, %138 : vector<8x128xf32>
    %141 = arith.divf %139, %140 : vector<8x128xf32>
    %142 = vector.extract_strided_slice %129 {offsets = [0, 256], sizes = [8, 128], strides = [1, 1]} : vector<8x512xf32> to vector<8x128xf32>
    %143 = math.tanh %142 : vector<8x128xf32>
    %144 = vector.extract_strided_slice %129 {offsets = [0, 384], sizes = [8, 128], strides = [1, 1]} : vector<8x512xf32> to vector<8x128xf32>
    %145 = arith.negf %144 : vector<8x128xf32>
    %146 = math.exp %145 : vector<8x128xf32>
    %cst_61 = arith.constant 1.000000e+00 : f32
    %147 = vector.broadcast %cst_61 : f32 to vector<8x128xf32>
    %148 = arith.addf %147, %146 : vector<8x128xf32>
    %149 = arith.divf %147, %148 : vector<8x128xf32>
    %150 = arith.mulf %141, %123 : vector<8x128xf32>
    %151 = arith.mulf %135, %143 : vector<8x128xf32>
    %152 = arith.addf %150, %151 : vector<8x128xf32>
    %153 = math.tanh %152 : vector<8x128xf32>
    %154 = arith.mulf %149, %153 : vector<8x128xf32>
    %c0_62 = arith.constant 0 : index
    %c0_63 = arith.constant 0 : index
    %155 = vector.load %arg7[%c0_62, %c0_63] : memref<8x128xf32, #tpu.memory_space<vmem>>, vector<8x128xf32>
    tpu.vector_store %arg7[%c0_62, %c0_63], %152 {strides = array<i32>} : memref<8x128xf32, #tpu.memory_space<vmem>>, vector<8x128xf32>,
    %c0_64 = arith.constant 0 : index
    %c0_65 = arith.constant 0 : index
    %156 = vector.load %arg6[%c0_64, %c0_65] : memref<8x128xf32, #tpu.memory_space<vmem>>, vector<8x128xf32>
    tpu.vector_store %arg6[%c0_64, %c0_65], %154 {strides = array<i32>} : memref<8x128xf32, #tpu.memory_space<vmem>>, vector<8x128xf32>,
    %157 = arith.index_cast %c3_i32 : i32 to index
    %c0_66 = arith.constant 0 : index
    %c0_67 = arith.constant 0 : index
    %158 = vector.load %arg5[%157, %c0_66, %c0_67] : memref<8x8x128xf32, #tpu.memory_space<vmem>>, vector<1x8x128xf32>
    %159 = vector.shape_cast %158 : vector<1x8x128xf32> to vector<8x128xf32>
    %160 = vector.shape_cast %154 : vector<8x128xf32> to vector<1x8x128xf32>
    tpu.vector_store %arg5[%157, %c0_66, %c0_67], %160 {strides = array<i32>} : memref<8x8x128xf32, #tpu.memory_space<vmem>>, vector<1x8x128xf32>,
    %c4_i32 = arith.constant 4 : i32
    %c0_68 = arith.constant 0 : index
    %c0_69 = arith.constant 0 : index
    %161 = vector.load %arg6[%c0_68, %c0_69] : memref<8x128xf32, #tpu.memory_space<vmem>>, vector<8x128xf32>
    %c0_70 = arith.constant 0 : index
    %c0_71 = arith.constant 0 : index
    %162 = vector.load %arg7[%c0_70, %c0_71] : memref<8x128xf32, #tpu.memory_space<vmem>>, vector<8x128xf32>
    %163 = arith.index_cast %c4_i32 : i32 to index
    %c0_72 = arith.constant 0 : index
    %c0_73 = arith.constant 0 : index
    %164 = vector.load %arg1[%163, %c0_72, %c0_73] : memref<8x8x512xf32, #tpu.memory_space<vmem>>, vector<1x8x512xf32>
    %165 = vector.shape_cast %164 : vector<1x8x512xf32> to vector<8x512xf32>
    %166 = arith.addf %165, %3 : vector<8x512xf32>
    %cst_74 = arith.constant dense<0.000000e+00> : vector<8x512xf32>
    %167 = tpu.matmul %161, %4, %cst_74 {dimension_numbers = #tpu.dot_dimension_numbers<[1], [0], [0], [1], [0, 0, 1, 1], [], []>} : vector<8x128xf32>, vector<128x512xf32>, vector<8x512xf32> -> vector<8x512xf32>
    %168 = arith.addf %166, %167 : vector<8x512xf32>
    %169 = vector.extract_strided_slice %168 {offsets = [0, 0], sizes = [8, 128], strides = [1, 1]} : vector<8x512xf32> to vector<8x128xf32>
    %170 = arith.negf %169 : vector<8x128xf32>
    %171 = math.exp %170 : vector<8x128xf32>
    %cst_75 = arith.constant 1.000000e+00 : f32
    %172 = vector.broadcast %cst_75 : f32 to vector<8x128xf32>
    %173 = arith.addf %172, %171 : vector<8x128xf32>
    %174 = arith.divf %172, %173 : vector<8x128xf32>
    %175 = vector.extract_strided_slice %168 {offsets = [0, 128], sizes = [8, 128], strides = [1, 1]} : vector<8x512xf32> to vector<8x128xf32>
    %176 = arith.negf %175 : vector<8x128xf32>
    %177 = math.exp %176 : vector<8x128xf32>
    %cst_76 = arith.constant 1.000000e+00 : f32
    %178 = vector.broadcast %cst_76 : f32 to vector<8x128xf32>
    %179 = arith.addf %178, %177 : vector<8x128xf32>
    %180 = arith.divf %178, %179 : vector<8x128xf32>
    %181 = vector.extract_strided_slice %168 {offsets = [0, 256], sizes = [8, 128], strides = [1, 1]} : vector<8x512xf32> to vector<8x128xf32>
    %182 = math.tanh %181 : vector<8x128xf32>
    %183 = vector.extract_strided_slice %168 {offsets = [0, 384], sizes = [8, 128], strides = [1, 1]} : vector<8x512xf32> to vector<8x128xf32>
    %184 = arith.negf %183 : vector<8x128xf32>
    %185 = math.exp %184 : vector<8x128xf32>
    %cst_77 = arith.constant 1.000000e+00 : f32
    %186 = vector.broadcast %cst_77 : f32 to vector<8x128xf32>
    %187 = arith.addf %186, %185 : vector<8x128xf32>
    %188 = arith.divf %186, %187 : vector<8x128xf32>
    %189 = arith.mulf %180, %162 : vector<8x128xf32>
    %190 = arith.mulf %174, %182 : vector<8x128xf32>
    %191 = arith.addf %189, %190 : vector<8x128xf32>
    %192 = math.tanh %191 : vector<8x128xf32>
    %193 = arith.mulf %188, %192 : vector<8x128xf32>
    %c0_78 = arith.constant 0 : index
    %c0_79 = arith.constant 0 : index
    %194 = vector.load %arg7[%c0_78, %c0_79] : memref<8x128xf32, #tpu.memory_space<vmem>>, vector<8x128xf32>
    tpu.vector_store %arg7[%c0_78, %c0_79], %191 {strides = array<i32>} : memref<8x128xf32, #tpu.memory_space<vmem>>, vector<8x128xf32>,
    %c0_80 = arith.constant 0 : index
    %c0_81 = arith.constant 0 : index
    %195 = vector.load %arg6[%c0_80, %c0_81] : memref<8x128xf32, #tpu.memory_space<vmem>>, vector<8x128xf32>
    tpu.vector_store %arg6[%c0_80, %c0_81], %193 {strides = array<i32>} : memref<8x128xf32, #tpu.memory_space<vmem>>, vector<8x128xf32>,
    %196 = arith.index_cast %c4_i32 : i32 to index
    %c0_82 = arith.constant 0 : index
    %c0_83 = arith.constant 0 : index
    %197 = vector.load %arg5[%196, %c0_82, %c0_83] : memref<8x8x128xf32, #tpu.memory_space<vmem>>, vector<1x8x128xf32>
    %198 = vector.shape_cast %197 : vector<1x8x128xf32> to vector<8x128xf32>
    %199 = vector.shape_cast %193 : vector<8x128xf32> to vector<1x8x128xf32>
    tpu.vector_store %arg5[%196, %c0_82, %c0_83], %199 {strides = array<i32>} : memref<8x8x128xf32, #tpu.memory_space<vmem>>, vector<1x8x128xf32>,
    %c5_i32 = arith.constant 5 : i32
    %c0_84 = arith.constant 0 : index
    %c0_85 = arith.constant 0 : index
    %200 = vector.load %arg6[%c0_84, %c0_85] : memref<8x128xf32, #tpu.memory_space<vmem>>, vector<8x128xf32>
    %c0_86 = arith.constant 0 : index
    %c0_87 = arith.constant 0 : index
    %201 = vector.load %arg7[%c0_86, %c0_87] : memref<8x128xf32, #tpu.memory_space<vmem>>, vector<8x128xf32>
    %202 = arith.index_cast %c5_i32 : i32 to index
    %c0_88 = arith.constant 0 : index
    %c0_89 = arith.constant 0 : index
    %203 = vector.load %arg1[%202, %c0_88, %c0_89] : memref<8x8x512xf32, #tpu.memory_space<vmem>>, vector<1x8x512xf32>
    %204 = vector.shape_cast %203 : vector<1x8x512xf32> to vector<8x512xf32>
    %205 = arith.addf %204, %3 : vector<8x512xf32>
    %cst_90 = arith.constant dense<0.000000e+00> : vector<8x512xf32>
    %206 = tpu.matmul %200, %4, %cst_90 {dimension_numbers = #tpu.dot_dimension_numbers<[1], [0], [0], [1], [0, 0, 1, 1], [], []>} : vector<8x128xf32>, vector<128x512xf32>, vector<8x512xf32> -> vector<8x512xf32>
    %207 = arith.addf %205, %206 : vector<8x512xf32>
    %208 = vector.extract_strided_slice %207 {offsets = [0, 0], sizes = [8, 128], strides = [1, 1]} : vector<8x512xf32> to vector<8x128xf32>
    %209 = arith.negf %208 : vector<8x128xf32>
    %210 = math.exp %209 : vector<8x128xf32>
    %cst_91 = arith.constant 1.000000e+00 : f32
    %211 = vector.broadcast %cst_91 : f32 to vector<8x128xf32>
    %212 = arith.addf %211, %210 : vector<8x128xf32>
    %213 = arith.divf %211, %212 : vector<8x128xf32>
    %214 = vector.extract_strided_slice %207 {offsets = [0, 128], sizes = [8, 128], strides = [1, 1]} : vector<8x512xf32> to vector<8x128xf32>
    %215 = arith.negf %214 : vector<8x128xf32>
    %216 = math.exp %215 : vector<8x128xf32>
    %cst_92 = arith.constant 1.000000e+00 : f32
    %217 = vector.broadcast %cst_92 : f32 to vector<8x128xf32>
    %218 = arith.addf %217, %216 : vector<8x128xf32>
    %219 = arith.divf %217, %218 : vector<8x128xf32>
    %220 = vector.extract_strided_slice %207 {offsets = [0, 256], sizes = [8, 128], strides = [1, 1]} : vector<8x512xf32> to vector<8x128xf32>
    %221 = math.tanh %220 : vector<8x128xf32>
    %222 = vector.extract_strided_slice %207 {offsets = [0, 384], sizes = [8, 128], strides = [1, 1]} : vector<8x512xf32> to vector<8x128xf32>
    %223 = arith.negf %222 : vector<8x128xf32>
    %224 = math.exp %223 : vector<8x128xf32>
    %cst_93 = arith.constant 1.000000e+00 : f32
    %225 = vector.broadcast %cst_93 : f32 to vector<8x128xf32>
    %226 = arith.addf %225, %224 : vector<8x128xf32>
    %227 = arith.divf %225, %226 : vector<8x128xf32>
    %228 = arith.mulf %219, %201 : vector<8x128xf32>
    %229 = arith.mulf %213, %221 : vector<8x128xf32>
    %230 = arith.addf %228, %229 : vector<8x128xf32>
    %231 = math.tanh %230 : vector<8x128xf32>
    %232 = arith.mulf %227, %231 : vector<8x128xf32>
    %c0_94 = arith.constant 0 : index
    %c0_95 = arith.constant 0 : index
    %233 = vector.load %arg7[%c0_94, %c0_95] : memref<8x128xf32, #tpu.memory_space<vmem>>, vector<8x128xf32>
    tpu.vector_store %arg7[%c0_94, %c0_95], %230 {strides = array<i32>} : memref<8x128xf32, #tpu.memory_space<vmem>>, vector<8x128xf32>,
    %c0_96 = arith.constant 0 : index
    %c0_97 = arith.constant 0 : index
    %234 = vector.load %arg6[%c0_96, %c0_97] : memref<8x128xf32, #tpu.memory_space<vmem>>, vector<8x128xf32>
    tpu.vector_store %arg6[%c0_96, %c0_97], %232 {strides = array<i32>} : memref<8x128xf32, #tpu.memory_space<vmem>>, vector<8x128xf32>,
    %235 = arith.index_cast %c5_i32 : i32 to index
    %c0_98 = arith.constant 0 : index
    %c0_99 = arith.constant 0 : index
    %236 = vector.load %arg5[%235, %c0_98, %c0_99] : memref<8x8x128xf32, #tpu.memory_space<vmem>>, vector<1x8x128xf32>
    %237 = vector.shape_cast %236 : vector<1x8x128xf32> to vector<8x128xf32>
    %238 = vector.shape_cast %232 : vector<8x128xf32> to vector<1x8x128xf32>
    tpu.vector_store %arg5[%235, %c0_98, %c0_99], %238 {strides = array<i32>} : memref<8x8x128xf32, #tpu.memory_space<vmem>>, vector<1x8x128xf32>,
    %c6_i32 = arith.constant 6 : i32
    %c0_100 = arith.constant 0 : index
    %c0_101 = arith.constant 0 : index
    %239 = vector.load %arg6[%c0_100, %c0_101] : memref<8x128xf32, #tpu.memory_space<vmem>>, vector<8x128xf32>
    %c0_102 = arith.constant 0 : index
    %c0_103 = arith.constant 0 : index
    %240 = vector.load %arg7[%c0_102, %c0_103] : memref<8x128xf32, #tpu.memory_space<vmem>>, vector<8x128xf32>
    %241 = arith.index_cast %c6_i32 : i32 to index
    %c0_104 = arith.constant 0 : index
    %c0_105 = arith.constant 0 : index
    %242 = vector.load %arg1[%241, %c0_104, %c0_105] : memref<8x8x512xf32, #tpu.memory_space<vmem>>, vector<1x8x512xf32>
    %243 = vector.shape_cast %242 : vector<1x8x512xf32> to vector<8x512xf32>
    %244 = arith.addf %243, %3 : vector<8x512xf32>
    %cst_106 = arith.constant dense<0.000000e+00> : vector<8x512xf32>
    %245 = tpu.matmul %239, %4, %cst_106 {dimension_numbers = #tpu.dot_dimension_numbers<[1], [0], [0], [1], [0, 0, 1, 1], [], []>} : vector<8x128xf32>, vector<128x512xf32>, vector<8x512xf32> -> vector<8x512xf32>
    %246 = arith.addf %244, %245 : vector<8x512xf32>
    %247 = vector.extract_strided_slice %246 {offsets = [0, 0], sizes = [8, 128], strides = [1, 1]} : vector<8x512xf32> to vector<8x128xf32>
    %248 = arith.negf %247 : vector<8x128xf32>
    %249 = math.exp %248 : vector<8x128xf32>
    %cst_107 = arith.constant 1.000000e+00 : f32
    %250 = vector.broadcast %cst_107 : f32 to vector<8x128xf32>
    %251 = arith.addf %250, %249 : vector<8x128xf32>
    %252 = arith.divf %250, %251 : vector<8x128xf32>
    %253 = vector.extract_strided_slice %246 {offsets = [0, 128], sizes = [8, 128], strides = [1, 1]} : vector<8x512xf32> to vector<8x128xf32>
    %254 = arith.negf %253 : vector<8x128xf32>
    %255 = math.exp %254 : vector<8x128xf32>
    %cst_108 = arith.constant 1.000000e+00 : f32
    %256 = vector.broadcast %cst_108 : f32 to vector<8x128xf32>
    %257 = arith.addf %256, %255 : vector<8x128xf32>
    %258 = arith.divf %256, %257 : vector<8x128xf32>
    %259 = vector.extract_strided_slice %246 {offsets = [0, 256], sizes = [8, 128], strides = [1, 1]} : vector<8x512xf32> to vector<8x128xf32>
    %260 = math.tanh %259 : vector<8x128xf32>
    %261 = vector.extract_strided_slice %246 {offsets = [0, 384], sizes = [8, 128], strides = [1, 1]} : vector<8x512xf32> to vector<8x128xf32>
    %262 = arith.negf %261 : vector<8x128xf32>
    %263 = math.exp %262 : vector<8x128xf32>
    %cst_109 = arith.constant 1.000000e+00 : f32
    %264 = vector.broadcast %cst_109 : f32 to vector<8x128xf32>
    %265 = arith.addf %264, %263 : vector<8x128xf32>
    %266 = arith.divf %264, %265 : vector<8x128xf32>
    %267 = arith.mulf %258, %240 : vector<8x128xf32>
    %268 = arith.mulf %252, %260 : vector<8x128xf32>
    %269 = arith.addf %267, %268 : vector<8x128xf32>
    %270 = math.tanh %269 : vector<8x128xf32>
    %271 = arith.mulf %266, %270 : vector<8x128xf32>
    %c0_110 = arith.constant 0 : index
    %c0_111 = arith.constant 0 : index
    %272 = vector.load %arg7[%c0_110, %c0_111] : memref<8x128xf32, #tpu.memory_space<vmem>>, vector<8x128xf32>
    tpu.vector_store %arg7[%c0_110, %c0_111], %269 {strides = array<i32>} : memref<8x128xf32, #tpu.memory_space<vmem>>, vector<8x128xf32>,
    %c0_112 = arith.constant 0 : index
    %c0_113 = arith.constant 0 : index
    %273 = vector.load %arg6[%c0_112, %c0_113] : memref<8x128xf32, #tpu.memory_space<vmem>>, vector<8x128xf32>
    tpu.vector_store %arg6[%c0_112, %c0_113], %271 {strides = array<i32>} : memref<8x128xf32, #tpu.memory_space<vmem>>, vector<8x128xf32>,
    %274 = arith.index_cast %c6_i32 : i32 to index
    %c0_114 = arith.constant 0 : index
    %c0_115 = arith.constant 0 : index
    %275 = vector.load %arg5[%274, %c0_114, %c0_115] : memref<8x8x128xf32, #tpu.memory_space<vmem>>, vector<1x8x128xf32>
    %276 = vector.shape_cast %275 : vector<1x8x128xf32> to vector<8x128xf32>
    %277 = vector.shape_cast %271 : vector<8x128xf32> to vector<1x8x128xf32>
    tpu.vector_store %arg5[%274, %c0_114, %c0_115], %277 {strides = array<i32>} : memref<8x8x128xf32, #tpu.memory_space<vmem>>, vector<1x8x128xf32>,
    %c7_i32 = arith.constant 7 : i32
    %c0_116 = arith.constant 0 : index
    %c0_117 = arith.constant 0 : index
    %278 = vector.load %arg6[%c0_116, %c0_117] : memref<8x128xf32, #tpu.memory_space<vmem>>, vector<8x128xf32>
    %c0_118 = arith.constant 0 : index
    %c0_119 = arith.constant 0 : index
    %279 = vector.load %arg7[%c0_118, %c0_119] : memref<8x128xf32, #tpu.memory_space<vmem>>, vector<8x128xf32>
    %280 = arith.index_cast %c7_i32 : i32 to index
    %c0_120 = arith.constant 0 : index
    %c0_121 = arith.constant 0 : index
    %281 = vector.load %arg1[%280, %c0_120, %c0_121] : memref<8x8x512xf32, #tpu.memory_space<vmem>>, vector<1x8x512xf32>
    %282 = vector.shape_cast %281 : vector<1x8x512xf32> to vector<8x512xf32>
    %283 = arith.addf %282, %3 : vector<8x512xf32>
    %cst_122 = arith.constant dense<0.000000e+00> : vector<8x512xf32>
    %284 = tpu.matmul %278, %4, %cst_122 {dimension_numbers = #tpu.dot_dimension_numbers<[1], [0], [0], [1], [0, 0, 1, 1], [], []>} : vector<8x128xf32>, vector<128x512xf32>, vector<8x512xf32> -> vector<8x512xf32>
    %285 = arith.addf %283, %284 : vector<8x512xf32>
    %286 = vector.extract_strided_slice %285 {offsets = [0, 0], sizes = [8, 128], strides = [1, 1]} : vector<8x512xf32> to vector<8x128xf32>
    %287 = arith.negf %286 : vector<8x128xf32>
    %288 = math.exp %287 : vector<8x128xf32>
    %cst_123 = arith.constant 1.000000e+00 : f32
    %289 = vector.broadcast %cst_123 : f32 to vector<8x128xf32>
    %290 = arith.addf %289, %288 : vector<8x128xf32>
    %291 = arith.divf %289, %290 : vector<8x128xf32>
    %292 = vector.extract_strided_slice %285 {offsets = [0, 128], sizes = [8, 128], strides = [1, 1]} : vector<8x512xf32> to vector<8x128xf32>
    %293 = arith.negf %292 : vector<8x128xf32>
    %294 = math.exp %293 : vector<8x128xf32>
    %cst_124 = arith.constant 1.000000e+00 : f32
    %295 = vector.broadcast %cst_124 : f32 to vector<8x128xf32>
    %296 = arith.addf %295, %294 : vector<8x128xf32>
    %297 = arith.divf %295, %296 : vector<8x128xf32>
    %298 = vector.extract_strided_slice %285 {offsets = [0, 256], sizes = [8, 128], strides = [1, 1]} : vector<8x512xf32> to vector<8x128xf32>
    %299 = math.tanh %298 : vector<8x128xf32>
    %300 = vector.extract_strided_slice %285 {offsets = [0, 384], sizes = [8, 128], strides = [1, 1]} : vector<8x512xf32> to vector<8x128xf32>
    %301 = arith.negf %300 : vector<8x128xf32>
    %302 = math.exp %301 : vector<8x128xf32>
    %cst_125 = arith.constant 1.000000e+00 : f32
    %303 = vector.broadcast %cst_125 : f32 to vector<8x128xf32>
    %304 = arith.addf %303, %302 : vector<8x128xf32>
    %305 = arith.divf %303, %304 : vector<8x128xf32>
    %306 = arith.mulf %297, %279 : vector<8x128xf32>
    %307 = arith.mulf %291, %299 : vector<8x128xf32>
    %308 = arith.addf %306, %307 : vector<8x128xf32>
    %309 = math.tanh %308 : vector<8x128xf32>
    %310 = arith.mulf %305, %309 : vector<8x128xf32>
    %c0_126 = arith.constant 0 : index
    %c0_127 = arith.constant 0 : index
    %311 = vector.load %arg7[%c0_126, %c0_127] : memref<8x128xf32, #tpu.memory_space<vmem>>, vector<8x128xf32>
    tpu.vector_store %arg7[%c0_126, %c0_127], %308 {strides = array<i32>} : memref<8x128xf32, #tpu.memory_space<vmem>>, vector<8x128xf32>,
    %c0_128 = arith.constant 0 : index
    %c0_129 = arith.constant 0 : index
    %312 = vector.load %arg6[%c0_128, %c0_129] : memref<8x128xf32, #tpu.memory_space<vmem>>, vector<8x128xf32>
    tpu.vector_store %arg6[%c0_128, %c0_129], %310 {strides = array<i32>} : memref<8x128xf32, #tpu.memory_space<vmem>>, vector<8x128xf32>,
    %313 = arith.index_cast %c7_i32 : i32 to index
    %c0_130 = arith.constant 0 : index
    %c0_131 = arith.constant 0 : index
    %314 = vector.load %arg5[%313, %c0_130, %c0_131] : memref<8x8x128xf32, #tpu.memory_space<vmem>>, vector<1x8x128xf32>
    %315 = vector.shape_cast %314 : vector<1x8x128xf32> to vector<8x128xf32>
    %316 = vector.shape_cast %310 : vector<8x128xf32> to vector<1x8x128xf32>
    tpu.vector_store %arg5[%313, %c0_130, %c0_131], %316 {strides = array<i32>} : memref<8x8x128xf32, #tpu.memory_space<vmem>>, vector<1x8x128xf32>,
    %c8_i32 = arith.constant 8 : i32
    return
  }
  func.func @transform_0(%arg0: i32) -> (i32, i32, i32) {
    %c0_i32 = arith.constant 0 : i32
    %c0_i32_0 = arith.constant 0 : i32
    %c0_i32_1 = arith.constant 0 : i32
    return %arg0, %c0_i32, %c0_i32_0 : i32, i32, i32
  }
  func.func @transform_1(%arg0: i32) -> (i32, i32) {
    %c0_i32 = arith.constant 0 : i32
    %c0_i32_0 = arith.constant 0 : i32
    %c0_i32_1 = arith.constant 0 : i32
    return %c0_i32, %c0_i32_0 : i32, i32
  }
  func.func @transform_2(%arg0: i32) -> (i32, i32) {
    %c0_i32 = arith.constant 0 : i32
    %c0_i32_0 = arith.constant 0 : i32
    %c0_i32_1 = arith.constant 0 : i32
    return %c0_i32, %c0_i32_0 : i32, i32
  }
  func.func @transform_3(%arg0: i32) -> (i32, i32) {
    %c0_i32 = arith.constant 0 : i32
    %c0_i32_0 = arith.constant 0 : i32
    %c0_i32_1 = arith.constant 0 : i32
    return %c0_i32, %c0_i32_0 : i32, i32
  }
  func.func @transform_4(%arg0: i32) -> (i32, i32, i32) {
    %c0_i32 = arith.constant 0 : i32
    %c0_i32_0 = arith.constant 0 : i32
    %c0_i32_1 = arith.constant 0 : i32
    return %arg0, %c0_i32, %c0_i32_0 : i32, i32, i32
  }
}

</mosaic_0001>

<bundles_post_ra>
// kernel: tpu_custom_call.1
= control target key start
LH: loop header
LB: loop body
LE: loop exit
PB: predicated region body
PF: predicated region fallthrough
CT: control target
= control target key end

     0   :  { %9 = vsyncpa [#allocation5], 0  ;;  %s2724_s0 = inlined_call_operand.hbm [shape: f32[8,8,512], index: 0, kind: input, shape index: {}]   ;;  %s2725_s1 = inlined_call_operand.hbm [shape: f32[8,512], index: 1, kind: input, shape index: {}]   ;;  %s2726_s2 = inlined_call_operand.hbm [shape: f32[128,512], index: 2, kind: input, shape index: {}]   ;;  %s2727_s3 = inlined_call_operand.hbm [shape: f32[8,128], index: 3, kind: input, shape index: {}]   ;;  %s2728_s4 = inlined_call_operand.hbm [shape: f32[8,8,128], index: 4, kind: output, shape index: {}]  }
   0x1   :  { %10 = vsyncpa [#allocation8], 0 }
   0x2   :  { %11 = vsyncpa [#allocation11], 0  ;;  %s31_s17 = sshll.u32 %s2725_s1, 4  ;;  %s32_s17 = int_to_ptr.hbm [resolvable:$true] %s31_s17 }
   0x3   :  { %12 = vsyncpa [#allocation6], 0  ;;  %s1827_s18 = smov [#allocation7]   ;;  %s17_s22 = sshll.u32 %s2724_s0, 4  ;;  %s18_s22 = int_to_ptr.hbm [resolvable:$true] %s17_s22 }
   0x4   :  { %s33_s19 = sshll.u32 %s1827_s18, 4  ;;  %s1828_s23 = smov [#allocation4]   ;;  %s34_s19 = int_to_ptr.vmem [resolvable:$true] %s33_s19 }
   0x5   :  { %36 = dma.hbm_to_vmem [thread:$0]  %s32_s17, 512, %s34_s19, [#allocation8]  }
   0x6   :  { %s19_s24 = sshll.u32 %s1828_s23, 4  ;;  %s1829_s25 = smov 512   ;;  %s20_s24 = int_to_ptr.vmem [resolvable:$true] %s19_s24 }
   0x7   :  { %s1830_s26 = smov 32   ;;  %s41_s1 = sshll.u32 %s2726_s2, 4  ;;  %s42_s1 = int_to_ptr.hbm [resolvable:$true] %s41_s1 }
   0x8   :  { %25 = dma.hbm_to_vmem [thread:$0]  %s18_s22, 4096, %s20_s24, [#allocation5], %s1829_s25, %s1829_s25, %s1830_s26  }
   0x9   :  { %s1831_s29 = smov [#allocation9]   ;;  %s55_s0 = sshll.u32 %s2727_s3, 4  ;;  %s56_s0 = int_to_ptr.hbm [resolvable:$true] %s55_s0 }
   0xa   :  { %s43_s30 = sshll.u32 %s1831_s29, 4  ;;  %s1832_s7 = smov [#allocation10]   ;;  %s44_s30 = int_to_ptr.vmem [resolvable:$true] %s43_s30 }
   0xb   :  { %49 = dma.hbm_to_vmem [thread:$0]  %s42_s1, 8192, %s44_s30, [#allocation8], %s1829_s25, %s1829_s25, %s1830_s26  }
   0xc   :  { %s57_s8 = sshll.u32 %s1832_s7, 4  ;;  %s58_s8 = int_to_ptr.vmem [resolvable:$true] %s57_s8 }
   0xd   :  { %60 = dma.hbm_to_vmem [thread:$0]  %s56_s0, 128, %s58_s8, [#allocation11]  }
   0xe   :  { %1819 = dma.done.wait [#allocation5], 4096  }
   0xf   :  { %1820 = vsyncadd [#allocation5], 4294963200 }
  0x10   :  { %1821 = dma.done.wait [#allocation8], 8704  }
  0x11   :  { %1822 = vsyncadd [#allocation8], 4294958592 }
  0x12   :  { %1823 = dma.done.wait [#allocation11], 128  }
  0x13   :  { %1824 = vsyncadd [#allocation11], 4294967168  ;;  %v1873_v0 = vld [vmem:[#allocation9 + $0x1e0] sm:$0xff]  ;;  %v1875_v1 = vld [vmem:[#allocation9 + $0x1e8] sm:$0xff]  ;;  %s1833_s2 = smov [#allocation12]   ;;  %s1453_s11 = sshll.u32 %s2728_s4, 4  ;;  %s1454_s11 = int_to_ptr.hbm [resolvable:$true] %s1453_s11 }
  0x14   :  { %2854 = vst [vmem:[#allocation17_spill] sm:$0xff] %v1873_v0  ;;  %v1877_v2 = vld [vmem:[#allocation9 + $0x1f8] sm:$0xff]  ;;  %163 = vmatpush.msra.mxu0 %v1873_v0  ;;  %183 = vmatpush.msra.mxu1 %v1875_v1  ;;  %v1881_v3 = vld [vmem:[#allocation9 + $0x1c0] sm:$0xff]  ;;  %v1883_v4 = vld [vmem:[#allocation9 + $0x1c8] sm:$0xff]  ;;  %s1451_s3 = sshll.u32 %s1833_s2, 4  ;;  %s1834_s12 = smov 128   ;;  %s1452_s3 = int_to_ptr.vmem [resolvable:$true] %s1451_s3 }
  0x15   :  { %v1885_v5 = vld [vmem:[#allocation9 + $0x1d8] sm:$0xff]  ;;  %223 = vmatpush.msra.mxu3 %v1877_v2  ;;  %v1888_v6 = vld [vmem:[#allocation9 + $0x1a0] sm:$0xff]  ;;  %v1890_v7 = vld [vmem:[#allocation9 + $0x1a8] sm:$0xff]  ;;  %s1835_s13 = smov 8  }
  0x16   :  { %164 = vmatpush.msra.mxu0 %v1881_v3  ;;  %184 = vmatpush.msra.mxu1 %v1883_v4  ;;  %v1894_v8 = vld [vmem:[#allocation9 + $0x1b8] sm:$0xff]  ;;  %v1897_v9 = vld [vmem:[#allocation9 + $0x180] sm:$0xff]  ;;  %v1899_v10 = vld [vmem:[#allocation9 + $0x188] sm:$0xff] }
  0x17   :  { %224 = vmatpush.msra.mxu3 %v1885_v5  ;;  %v1903_v11 = vld [vmem:[#allocation9 + $0x198] sm:$0xff]  ;;  %v1906_v12 = vld [vmem:[#allocation9 + $0x160] sm:$0xff]  ;;  %v1908_v13 = vld [vmem:[#allocation9 + $0x168] sm:$0xff] }
  0x18   :  { %165 = vmatpush.msra.mxu0 %v1888_v6  ;;  %185 = vmatpush.msra.mxu1 %v1890_v7  ;;  %v1912_v14 = vld [vmem:[#allocation9 + $0x178] sm:$0xff]  ;;  %v1915_v15 = vld [vmem:[#allocation9 + $0x140] sm:$0xff]  ;;  %v1917_v16 = vld [vmem:[#allocation9 + $0x148] sm:$0xff] }
  0x19   :  { %225 = vmatpush.msra.mxu3 %v1894_v8  ;;  %v1919_v17 = vld [vmem:[#allocation9 + $0x1f0] sm:$0xff]  ;;  %v1923_v18 = vld [vmem:[#allocation9 + $0x158] sm:$0xff]  ;;  %v1928_v20 = vld [vmem:[#allocation9 + $0x120] sm:$0xff] }
  0x1a   :  { %166 = vmatpush.msra.mxu0 %v1897_v9  ;;  %186 = vmatpush.msra.mxu1 %v1899_v10  ;;  %v1925_v19 = vld [vmem:[#allocation9 + $0x1d0] sm:$0xff]  ;;  %v1930_v21 = vld [vmem:[#allocation9 + $0x128] sm:$0xff]  ;;  %v1935_v22 = vld [vmem:[#allocation9 + $0x138] sm:$0xff] }
  0x1b   :  { %226 = vmatpush.msra.mxu3 %v1903_v11  ;;  %203 = vmatpush.msra.mxu2 %v1919_v17  ;;  %v1937_v23 = vld [vmem:[#allocation9 + $0x1b0] sm:$0xff]  ;;  %v1940_v24 = vld [vmem:[#allocation9 + $0x100] sm:$0xff]  ;;  %v1942_v25 = vld [vmem:[#allocation9 + $0x108] sm:$0xff] }
  0x1c   :  { %167 = vmatpush.msra.mxu0 %v1906_v12  ;;  %187 = vmatpush.msra.mxu1 %v1908_v13  ;;  %v1947_v26 = vld [vmem:[#allocation9 + $0x118] sm:$0xff]  ;;  %v1949_v27 = vld [vmem:[#allocation9 + $0x190] sm:$0xff]  ;;  %v1952_v28 = vld [vmem:[#allocation9 + $0xe0] sm:$0xff] }
  0x1d   :  { %227 = vmatpush.msra.mxu3 %v1912_v14  ;;  %204 = vmatpush.msra.mxu2 %v1925_v19  ;;  %v1954_v29 = vld [vmem:[#allocation9 + $0xe8] sm:$0xff]  ;;  %v1959_v30 = vld [vmem:[#allocation9 + $0xf8] sm:$0xff]  ;;  %v1961_v31 = vld [vmem:[#allocation9 + $0x170] sm:$0xff] }
  0x1e   :  { %168 = vmatpush.msra.mxu0 %v1915_v15  ;;  %188 = vmatpush.msra.mxu1 %v1917_v16  ;;  %v1964_v32 = vld [vmem:[#allocation9 + $0xc0] sm:$0xff]  ;;  %v1966_v33 = vld [vmem:[#allocation9 + $0xc8] sm:$0xff]  ;;  %v1971_v34 = vld [vmem:[#allocation9 + $0xd8] sm:$0xff] }
  0x1f   :  { %228 = vmatpush.msra.mxu3 %v1923_v18  ;;  %205 = vmatpush.msra.mxu2 %v1937_v23  ;;  %2855 = vst [vmem:[#allocation18_spill] sm:$0xff] %v1966_v33  ;;  %v1973_v35 = vld [vmem:[#allocation9 + $0x150] sm:$0xff]  ;;  %v1976_v36 = vld [vmem:[#allocation9 + $0xa0] sm:$0xff]  ;;  %v1978_v37 = vld [vmem:[#allocation9 + $0xa8] sm:$0xff] }
  0x20   :  { %169 = vmatpush.msra.mxu0 %v1928_v20  ;;  %189 = vmatpush.msra.mxu1 %v1930_v21  ;;  %2856 = vst [vmem:[#allocation19_spill] sm:$0xff] %v1971_v34  ;;  %v1983_v38 = vld [vmem:[#allocation9 + $0xb8] sm:$0xff]  ;;  %v1985_v39 = vld [vmem:[#allocation9 + $0x130] sm:$0xff]  ;;  %v1988_v40 = vld [vmem:[#allocation9 + $0x80] sm:$0xff] }
  0x21   :  { %229 = vmatpush.msra.mxu3 %v1935_v22  ;;  %206 = vmatpush.msra.mxu2 %v1949_v27  ;;  %2857 = vst [vmem:[#allocation20_spill] sm:$0xff] %v1976_v36  ;;  %v1990_v41 = vld [vmem:[#allocation9 + $0x88] sm:$0xff]  ;;  %v1993_v42 = vld [vmem:[#allocation10] sm:$0xff]  ;;  %v1997_v43 = vld [vmem:[#allocation9 + $0x98] sm:$0xff] }
  0x22   :  { %170 = vmatpush.msra.mxu0 %v1940_v24  ;;  %190 = vmatpush.msra.mxu1 %v1942_v25  ;;  %2858 = vst [vmem:[#allocation21_spill] sm:$0xff] %v1978_v37  ;;  %v1999_v44 = vld [vmem:[#allocation9 + $0x110] sm:$0xff]  ;;  %v2002_v45 = vld [vmem:[#allocation9 + $0x60] sm:$0xff]  ;;  %v2004_v46 = vld [vmem:[#allocation9 + $0x68] sm:$0xff]  ;;  %1501 = vtanh.f32 %v1993_v42 }
  0x23   :  { %230 = vmatpush.msra.mxu3 %v1947_v26  ;;  %207 = vmatpush.msra.mxu2 %v1961_v31  ;;  %2859 = vst [vmem:[#allocation22_spill] sm:$0xff] %v1983_v38  ;;  %v2009_v47 = vld [vmem:[#allocation9 + $0x78] sm:$0xff]  ;;  %v2012_v48 = vld [vmem:[#allocation9 + $0xf0] sm:$0xff]  ;;  %v2015_v49 = vld [vmem:[#allocation9 + $0x40] sm:$0xff] }
  0x24   :  { %171 = vmatpush.msra.mxu0 %v1952_v28  ;;  %191 = vmatpush.msra.mxu1 %v1954_v29  ;;  %2860 = vst [vmem:[#allocation23_spill] sm:$0xff] %v1988_v40  ;;  %v2017_v50 = vld [vmem:[#allocation9 + $0x48] sm:$0xff]  ;;  %v2022_v51 = vld [vmem:[#allocation9 + $0x58] sm:$0xff]  ;;  %v2024_v52 = vld [vmem:[#allocation9 + $0xd0] sm:$0xff] }
  0x25   :  { %231 = vmatpush.msra.mxu3 %v1959_v30  ;;  %2861 = vst [vmem:[#allocation24_spill] sm:$0xff] %v1990_v41  ;;  %208 = vmatpush.msra.mxu2 %v1973_v35  ;;  %v2027_v53 = vld [vmem:[#allocation9 + $0x20] sm:$0xff]  ;;  %v2029_v54 = vld [vmem:[#allocation9 + $0x28] sm:$0xff]  ;;  %v2034_v55 = vld [vmem:[#allocation9 + $0x38] sm:$0xff] }
  0x26   :  { %172 = vmatpush.msra.mxu0 %v1964_v32  ;;  %192 = vmatpush.msra.mxu1 %v1966_v33  ;;  %2862 = vst [vmem:[#allocation25_spill] sm:$0xff] %v1993_v42  ;;  %v2036_v56 = vld [vmem:[#allocation9 + $0xb0] sm:$0xff]  ;;  %v2039_v57 = vld [vmem:[#allocation9] sm:$0xff]  ;;  %v2041_v58 = vld [vmem:[#allocation9 + $0x8] sm:$0xff] }
  0x27   :  { %232 = vmatpush.msra.mxu3 %v1971_v34  ;;  %2863 = vst [vmem:[#allocation26_spill] sm:$0xff] %v1997_v43  ;;  %209 = vmatpush.msra.mxu2 %v1985_v39  ;;  %v2046_v60 = vld [vmem:[#allocation9 + $0x18] sm:$0xff]  ;;  %v2052_v61 = vld [vmem:[#allocation9 + $0x90] sm:$0xff] }
  0x28   :  { %173 = vmatpush.msra.mxu0 %v1976_v36  ;;  %193 = vmatpush.msra.mxu1 %v1978_v37  ;;  %2864 = vst [vmem:[#allocation27_spill] sm:$0xff] %v2002_v45  ;;  %v1502_v59 = vpop.eup %1501  ;;  %v2055_v62 = vld [vmem:[#allocation9 + $0x70] sm:$0xff] }
  0x29   :  { %233 = vmatpush.msra.mxu3 %v1983_v38  ;;  %2865 = vst [vmem:[#allocation28_spill] sm:$0xff] %v2004_v46  ;;  %210 = vmatpush.msra.mxu2 %v1999_v44  ;;  %v2059_v63 = vld [vmem:[#allocation9 + $0x50] sm:$0xff] }
  0x2a   :  { %174 = vmatpush.msra.mxu0 %v1988_v40  ;;  %194 = vmatpush.msra.mxu1 %v1990_v41  ;;  %2866 = vst [vmem:[#allocation29_spill] sm:$0xff] %v2009_v47  ;;  %v2065_v42 = vld [vmem:[#allocation9 + $0x30] sm:$0xff] }
  0x2b   :  { %234 = vmatpush.msra.mxu3 %v1997_v43  ;;  %2867 = vst [vmem:[#allocation30_spill] sm:$0xff] %v2015_v49  ;;  %211 = vmatpush.msra.mxu2 %v2012_v48 }
  0x2c   :  { %2868 = vst [vmem:[#allocation31_spill] sm:$0xff] %v2017_v50  ;;  %175 = vmatpush.msra.mxu0 %v2002_v45  ;;  %195 = vmatpush.msra.mxu1 %v2004_v46 }
  0x2d   :  { %2869 = vst [vmem:[#allocation32_spill] sm:$0xff] %v2022_v51  ;;  %235 = vmatpush.msra.mxu3 %v2009_v47  ;;  %212 = vmatpush.msra.mxu2 %v2024_v52 }
  0x2e   :  { %2870 = vst [vmem:[#allocation33_spill] sm:$0xff] %v2024_v52  ;;  %176 = vmatpush.msra.mxu0 %v2015_v49  ;;  %196 = vmatpush.msra.mxu1 %v2017_v50 }
  0x2f   :  { %2871 = vst [vmem:[#allocation34_spill] sm:$0xff] %v2027_v53  ;;  %236 = vmatpush.msra.mxu3 %v2022_v51  ;;  %213 = vmatpush.msra.mxu2 %v2036_v56 }
  0x30   :  { %2872 = vst [vmem:[#allocation35_spill] sm:$0xff] %v2029_v54  ;;  %177 = vmatpush.msra.mxu0 %v2027_v53  ;;  %197 = vmatpush.msra.mxu1 %v2029_v54 }
  0x31   :  { %2873 = vst [vmem:[#allocation36_spill] sm:$0xff] %v2034_v55  ;;  %237 = vmatpush.msra.mxu3 %v2034_v55  ;;  %214 = vmatpush.msra.mxu2 %v2052_v61 }
  0x32   :  { %2874 = vst [vmem:[#allocation37_spill] sm:$0xff] %v2036_v56  ;;  %178 = vmatpush.msra.mxu0 %v2039_v57  ;;  %198 = vmatpush.msra.mxu1 %v2041_v58 }
  0x33   :  { %2875 = vst [vmem:[#allocation38_spill] sm:$0xff] %v2039_v57  ;;  %238 = vmatpush.msra.mxu3 %v2046_v60  ;;  %179 = vmatmul.f32.vlgmr.msra.gmra.mxu0 %v1502_v59 }
  0x34   :  { %2876 = vst [vmem:[#allocation39_spill] sm:$0xff] %v2041_v58  ;;  %199 = vmatmul.f32.vlgmr.msra.gmra.mxu1 %v1502_v59  ;;  %239 = vmatmul.f32.vlgmr.msra.gmra.mxu3 %v1502_v59 }
  0x35   :  { %2877 = vst [vmem:[#allocation40_spill] sm:$0xff] %v2046_v60  ;;  %324 = vmatpush.msrb.mxu0 %v1873_v0  ;;  %344 = vmatpush.msrb.mxu1 %v1875_v1  ;;  %v2071_v0 = vld [vmem:[#allocation9 + $0x10] sm:$0xff] }
  0x36   :  { %2878 = vst [vmem:[#allocation41_spill] sm:$0xff] %v2052_v61  ;;  %384 = vmatpush.msrb.mxu3 %v1877_v2  ;;  %215 = vmatpush.msra.mxu2 %v2055_v62 }
  0x37   :  { %2879 = vst [vmem:[#allocation42_spill] sm:$0xff] %v2055_v62  ;;  %325 = vmatpush.msrb.mxu0 %v1881_v3  ;;  %345 = vmatpush.msrb.mxu1 %v1883_v4 }
  0x38   :  { %2880 = vst [vmem:[#allocation43_spill] sm:$0xff] %v2059_v63  ;;  %385 = vmatpush.msrb.mxu3 %v1885_v5  ;;  %216 = vmatpush.msra.mxu2 %v2059_v63 }
  0x39   :  { %2881 = vst [vmem:[#allocation44_spill] sm:$0xff] %v2065_v42  ;;  %326 = vmatpush.msrb.mxu0 %v1888_v6  ;;  %346 = vmatpush.msrb.mxu1 %v1890_v7 }
  0x3a   :  { %2882 = vst [vmem:[#allocation45_spill] sm:$0xff] %v2071_v0  ;;  %386 = vmatpush.msrb.mxu3 %v1894_v8  ;;  %217 = vmatpush.msra.mxu2 %v2065_v42 }
  0x3b   :  { %327 = vmatpush.msrb.mxu0 %v1897_v9  ;;  %347 = vmatpush.msrb.mxu1 %v1899_v10 }
  0x3c   :  { %387 = vmatpush.msrb.mxu3 %v1903_v11  ;;  %218 = vmatpush.msra.mxu2 %v2071_v0 }
  0x3d   :  { %328 = vmatpush.msrb.mxu0 %v1906_v12  ;;  %219 = vmatmul.f32.vlgmr.msra.gmra.mxu2 %v1502_v59  ;;  %v2883_v59 = vld [vmem:[#allocation17_spill] sm:$0xff] }
  0x3e   :  { %348 = vmatpush.msrb.mxu1 %v1908_v13  ;;  %364 = vmatpush.msrb.mxu2 %v1919_v17 }
  0x3f   :  { %388 = vmatpush.msrb.mxu3 %v1912_v14  ;;  %329 = vmatpush.msrb.mxu0 %v1915_v15 }
  0x40   :  { %349 = vmatpush.msrb.mxu1 %v1917_v16  ;;  %365 = vmatpush.msrb.mxu2 %v1925_v19 }
  0x41   :  { %389 = vmatpush.msrb.mxu3 %v1923_v18  ;;  %330 = vmatpush.msrb.mxu0 %v1928_v20 }
  0x42   :  { %350 = vmatpush.msrb.mxu1 %v1930_v21  ;;  %366 = vmatpush.msrb.mxu2 %v1937_v23 }
  0x43   :  { %390 = vmatpush.msrb.mxu3 %v1935_v22  ;;  %331 = vmatpush.msrb.mxu0 %v1940_v24 }
  0x44   :  { %351 = vmatpush.msrb.mxu1 %v1942_v25  ;;  %367 = vmatpush.msrb.mxu2 %v1949_v27 }
  0x45   :  { %391 = vmatpush.msrb.mxu3 %v1947_v26  ;;  %332 = vmatpush.msrb.mxu0 %v1952_v28 }
  0x46   :  { %352 = vmatpush.msrb.mxu1 %v1954_v29  ;;  %368 = vmatpush.msrb.mxu2 %v1961_v31 }
  0x47   :  { %392 = vmatpush.msrb.mxu3 %v1959_v30  ;;  %333 = vmatpush.msrb.mxu0 %v1964_v32 }
  0x48   :  { %353 = vmatpush.msrb.mxu1 %v1966_v33  ;;  %369 = vmatpush.msrb.mxu2 %v1973_v35 }
  0x49   :  { %393 = vmatpush.msrb.mxu3 %v1971_v34  ;;  %334 = vmatpush.msrb.mxu0 %v1976_v36 }
  0x4a   :  { %354 = vmatpush.msrb.mxu1 %v1978_v37  ;;  %370 = vmatpush.msrb.mxu2 %v1985_v39 }
  0x4b   :  { %394 = vmatpush.msrb.mxu3 %v1983_v38  ;;  %335 = vmatpush.msrb.mxu0 %v1988_v40 }
  0x4c   :  { %355 = vmatpush.msrb.mxu1 %v1990_v41  ;;  %371 = vmatpush.msrb.mxu2 %v1999_v44 }
  0x4d   :  { %395 = vmatpush.msrb.mxu3 %v1997_v43  ;;  %336 = vmatpush.msrb.mxu0 %v2002_v45 }
  0x4e   :  { %356 = vmatpush.msrb.mxu1 %v2004_v46  ;;  %372 = vmatpush.msrb.mxu2 %v2012_v48 }
  0x4f   :  { %396 = vmatpush.msrb.mxu3 %v2009_v47  ;;  %337 = vmatpush.msrb.mxu0 %v2015_v49 }
  0x50   :  { %357 = vmatpush.msrb.mxu1 %v2017_v50  ;;  %373 = vmatpush.msrb.mxu2 %v2024_v52 }
  0x51   :  { %397 = vmatpush.msrb.mxu3 %v2022_v51  ;;  %338 = vmatpush.msrb.mxu0 %v2027_v53 }
  0x52   :  { %358 = vmatpush.msrb.mxu1 %v2029_v54  ;;  %374 = vmatpush.msrb.mxu2 %v2036_v56 }
  0x53   :  { %398 = vmatpush.msrb.mxu3 %v2034_v55  ;;  %339 = vmatpush.msrb.mxu0 %v2039_v57 }
  0x54   :  { %359 = vmatpush.msrb.mxu1 %v2041_v58  ;;  %375 = vmatpush.msrb.mxu2 %v2052_v61 }
  0x55   :  { %399 = vmatpush.msrb.mxu3 %v2046_v60  ;;  %486 = vmatpush.msra.mxu0 %v2883_v59 }
  0x56   :  { %506 = vmatpush.msra.mxu1 %v1875_v1  ;;  %376 = vmatpush.msrb.mxu2 %v2055_v62 }
  0x57   :  { %546 = vmatpush.msra.mxu3 %v1877_v2  ;;  %487 = vmatpush.msra.mxu0 %v1881_v3 }
  0x58   :  { %507 = vmatpush.msra.mxu1 %v1883_v4  ;;  %377 = vmatpush.msrb.mxu2 %v2059_v63 }
  0x59   :  { %547 = vmatpush.msra.mxu3 %v1885_v5  ;;  %488 = vmatpush.msra.mxu0 %v1888_v6 }
  0x5a   :  { %508 = vmatpush.msra.mxu1 %v1890_v7  ;;  %378 = vmatpush.msrb.mxu2 %v2065_v42 }
  0x5b   :  { %548 = vmatpush.msra.mxu3 %v1894_v8  ;;  %489 = vmatpush.msra.mxu0 %v1897_v9 }
  0x5c   :  { %509 = vmatpush.msra.mxu1 %v1899_v10  ;;  %379 = vmatpush.msrb.mxu2 %v2071_v0 }
  0x5d   :  { %549 = vmatpush.msra.mxu3 %v1903_v11  ;;  %490 = vmatpush.msra.mxu0 %v1906_v12 }
  0x5e   :  { %526 = vmatpush.msra.mxu2 %v1919_v17  ;;  %510 = vmatpush.msra.mxu1 %v1908_v13 }
  0x5f   :  { %550 = vmatpush.msra.mxu3 %v1912_v14  ;;  %491 = vmatpush.msra.mxu0 %v1915_v15 }
  0x60   :  { %527 = vmatpush.msra.mxu2 %v1925_v19  ;;  %511 = vmatpush.msra.mxu1 %v1917_v16 }
  0x61   :  { %551 = vmatpush.msra.mxu3 %v1923_v18  ;;  %492 = vmatpush.msra.mxu0 %v1928_v20 }
  0x62   :  { %528 = vmatpush.msra.mxu2 %v1937_v23  ;;  %512 = vmatpush.msra.mxu1 %v1930_v21 }
  0x63   :  { %552 = vmatpush.msra.mxu3 %v1935_v22  ;;  %493 = vmatpush.msra.mxu0 %v1940_v24 }
  0x64   :  { %529 = vmatpush.msra.mxu2 %v1949_v27  ;;  %513 = vmatpush.msra.mxu1 %v1942_v25 }
  0x65   :  { %553 = vmatpush.msra.mxu3 %v1947_v26  ;;  %494 = vmatpush.msra.mxu0 %v1952_v28 }
  0x66   :  { %530 = vmatpush.msra.mxu2 %v1961_v31  ;;  %514 = vmatpush.msra.mxu1 %v1954_v29 }
  0x67   :  { %554 = vmatpush.msra.mxu3 %v1959_v30  ;;  %495 = vmatpush.msra.mxu0 %v1964_v32 }
  0x68   :  { %531 = vmatpush.msra.mxu2 %v1973_v35  ;;  %515 = vmatpush.msra.mxu1 %v1966_v33 }
  0x69   :  { %555 = vmatpush.msra.mxu3 %v1971_v34  ;;  %496 = vmatpush.msra.mxu0 %v1976_v36 }
  0x6a   :  { %532 = vmatpush.msra.mxu2 %v1985_v39  ;;  %516 = vmatpush.msra.mxu1 %v1978_v37 }
  0x6b   :  { %556 = vmatpush.msra.mxu3 %v1983_v38  ;;  %497 = vmatpush.msra.mxu0 %v1988_v40 }
  0x6c   :  { %533 = vmatpush.msra.mxu2 %v1999_v44  ;;  %517 = vmatpush.msra.mxu1 %v1990_v41 }
  0x6d   :  { %557 = vmatpush.msra.mxu3 %v1997_v43  ;;  %498 = vmatpush.msra.mxu0 %v2002_v45 }
  0x6e   :  { %534 = vmatpush.msra.mxu2 %v2012_v48  ;;  %518 = vmatpush.msra.mxu1 %v2004_v46 }
  0x6f   :  { %558 = vmatpush.msra.mxu3 %v2009_v47  ;;  %499 = vmatpush.msra.mxu0 %v2015_v49  ;;  %v2202_v47 = vld [vmem:[#allocation7 + $0x18] sm:$0xff] }
  0x70   :  { %535 = vmatpush.msra.mxu2 %v2024_v52  ;;  %519 = vmatpush.msra.mxu1 %v2017_v50  ;;  %2886 = vst [vmem:[#allocation47_spill] sm:$0xff] %v2202_v47  ;;  %v2888_v52 = vld [vmem:[#allocation25_spill] sm:$0xff] }
  0x71   :  { %559 = vmatpush.msra.mxu3 %v2022_v51  ;;  %500 = vmatpush.msra.mxu0 %v2027_v53  ;;  %v2196_v53 = vld [vmem:[#allocation7] sm:$0xff]  ;;  %v156_v51 = vld [vmem:[#allocation4 + $0x8] sm:$0xff] }
  0x72   :  { %536 = vmatpush.msra.mxu2 %v2036_v56  ;;  %520 = vmatpush.msra.mxu1 %v2029_v54  ;;  %2884 = vst [vmem:[#allocation17_spill] sm:$0xff] %v2196_v53  ;;  %v155_v54 = vld [vmem:[#allocation4] sm:$0xff] }
  0x73   :  { %560 = vmatpush.msra.mxu3 %v2034_v55  ;;  %501 = vmatpush.msra.mxu0 %v2039_v57  ;;  %v2198_v55 = vld [vmem:[#allocation7 + $0x8] sm:$0xff]  ;;  %v159_v57 = vadd.f32 %v155_v54, %v2196_v53  ;;  %v2205_v54 = vld [vmem:[#allocation7 + $0x10] sm:$0xff] }
  0x74   :  { %537 = vmatpush.msra.mxu2 %v2052_v61  ;;  %521 = vmatpush.msra.mxu1 %v2041_v58  ;;  %2885 = vst [vmem:[#allocation46_spill] sm:$0xff] %v2198_v55  ;;  %v160_v58 = vadd.f32 %v156_v51, %v2198_v55  ;;  %v157_v51 = vld [vmem:[#allocation4 + $0x10] sm:$0xff] }
  0x75   :  { %561 = vmatpush.msra.mxu3 %v2046_v60  ;;  %2887 = vst [vmem:[#allocation48_spill] sm:$0xff] %v2205_v54 }
  0x76   :  { %538 = vmatpush.msra.mxu2 %v2055_v62 }
  0x78   :  { %539 = vmatpush.msra.mxu2 %v2059_v63  ;;  %v158_v63 = vld [vmem:[#allocation4 + $0x18] sm:$0xff] }
  0x7a   :  { %540 = vmatpush.msra.mxu2 %v2065_v42 }
  0x7c   :  { %541 = vmatpush.msra.mxu2 %v2071_v0  ;;  %v162_v0 = vadd.f32 %v158_v63, %v2202_v47 }
  0xb0   :  { %v180_v50 = vpop.f32.mrf.mxu0 }
  0xb1   :  { %v243_v60 = vadd.f32 %v180_v50, %v159_v57  ;;  %v200_v49 = vpop.f32.mrf.mxu1 }
  0xb2   :  { %v244_v62 = vadd.f32 %v200_v49, %v160_v58  ;;  %v161_v49 = vadd.f32 %v157_v51, %v2205_v54 }
  0xb3   :  { %v1468_v42 = vmul.f32 -1.442695, %v243_v60 }
  0xb4   :  { %v1469_v46 = vmul.f32 -1.442695, %v244_v62 }
  0xb5   :  { %1503 = vpow2.f32 %v1468_v42 }
  0xb6   :  { %1505 = vpow2.f32 %v1469_v46 }
  0xb7   :  { %v240_v45 = vpop.f32.mrf.mxu3 }
  0xb8   :  { %v246_v43 = vadd.f32 %v240_v45, %v162_v0 }
  0xba   :  { %v1470_v61 = vmul.f32 -1.442695, %v246_v43 }
  0xbb   :  { %v1504_v41 = vpop.eup %1503 }
  0xbc   :  { %v1506_v55 = vpop.eup %1505  ;;  %v250_v50 = vadd.f32 1.0, %v1504_v41  ;;  %1507 = vpow2.f32 %v1470_v61 }
  0xbd   :  { %v269_v57 = vadd.f32 1.0, %v1506_v55 }
  0xbe   :  { %1509 = vrcp.f32 %v250_v50  ;;  %v262_v53 = vand.u32 2147483648, %v250_v50  ;;  %v260_v55 = vand.u32 2147483647, %v250_v50  ;;  %vm256_vm2 = vweird.f32 %v250_v50 }
  0xbf   :  { %1511 = vrcp.f32 %v269_v57  ;;  %v281_v41 = vand.u32 2147483648, %v269_v57  ;;  %v279_v51 = vand.u32 2147483647, %v269_v57  ;;  %vm275_vm3 = vweird.f32 %v269_v57 }
  0xc0   :  { %v220_v58 = vpop.f32.mrf.mxu2  ;;  %vm261_vm6 = vcmp.eq.f32.partialorder %v260_v55, 8.507059e+37  ;;  %v2897_v55 = vld [vmem:[#allocation24_spill] sm:$0xff] }
  0xc1   :  { %v245_v62 = vadd.f32 %v220_v58, %v161_v49  ;;  %vm280_vm7 = vcmp.eq.f32.partialorder %v279_v51, 8.507059e+37  ;;  %v2898_v51 = vld [vmem:[#allocation41_spill] sm:$0xff] }
  0xc2   :  { %v1508_v60 = vpop.eup %1507 }
  0xc3   :  { %v289_v42 = vadd.f32 1.0, %v1508_v60  ;;  %v263_v60 = vor.u32 1.1754944e-38, %v262_v53 }
  0xc4   :  { %v1510_v46 = vpop.eup %1509 }
  0xc5   :  { %v1512_v63 = vpop.eup %1511  ;;  %v252_v0 = vmul.f32 %v1510_v46, %v250_v50  ;;  %1513 = vrcp.f32 %v289_v42  ;;  %vm257_vm0 = vweird.f32 %v1510_v46  ;;  %v301_v33 = vand.u32 2147483648, %v289_v42 }
  0xc6   :  { %v271_v43 = vmul.f32 %v1512_v63, %v269_v57  ;;  %1515 = vtanh.f32 %v245_v62  ;;  %vm276_vm1 = vweird.f32 %v1512_v63  ;;  %vm258_vm4 = vmor %vm256_vm2, %vm257_vm0  ;;  %v282_v62 = vor.u32 1.1754944e-38, %v281_v41  ;;  %v2896_v41 = vld [vmem:[#allocation23_spill] sm:$0xff] }
  0xc7   :  { %v253_v45 = vsub.f32 1.0, %v252_v0  ;;  %vm277_vm5 = vmor %vm275_vm3, %vm276_vm1  ;;  %vm295_vm9 = vweird.f32 %v289_v42  ;;  %v302_v53 = vor.u32 1.1754944e-38, %v301_v33  ;;  %v2889_v33 = vld [vmem:[#allocation18_spill] sm:$0xff] }
  0xc8   :  { %v272_v47 = vsub.f32 1.0, %v271_v43 }
  0xc9   :  { %v254_v61 = vmul.f32 %v1510_v46, %v253_v45 }
  0xca   :  { %v273_v40 = vmul.f32 %v1512_v63, %v272_v47 }
  0xcb   :  { %v1514_v54 = vpop.eup %1513  ;;  %v255_v38 = vadd.f32 %v1510_v46, %v254_v61 }
  0xcc   :  { %v1516_v49 = vpop.eup %1515  ;;  %v291_v58 = vmul.f32 %v1514_v54, %v289_v42  ;;  %v274_v56 = vadd.f32 %v1512_v63, %v273_v40  ;;  %vm296_vm8 = vweird.f32 %v1514_v54  ;;  %v299_v40 = vand.u32 2147483647, %v289_v42  ;;  %v2894_v42 = vld [vmem:[#allocation37_spill] sm:$0xff] }
  0xcd   :  { %v259_v0 = vsel %vm258_vm4, %v1510_v46, %v255_v38  ;;  %vm297_vm10 = vmor %vm295_vm9, %vm296_vm8 }
  0xce   :  { %v292_v43 = vsub.f32 1.0, %v291_v58  ;;  %v264_v45 = vsel %vm261_vm6, %v263_v60, %v259_v0  ;;  %v278_v37 = vsel %vm277_vm5, %v1512_v63, %v274_v56  ;;  %vm300_vm11 = vcmp.eq.f32.partialorder %v299_v40, 8.507059e+37  ;;  %v2895_v63 = vld [vmem:[#allocation22_spill] sm:$0xff]  ;;  %v2900_v58 = vld [vmem:[#allocation27_spill] sm:$0xff]  ;;  %v2901_v60 = vld [vmem:[#allocation28_spill] sm:$0xff] }
  0xcf   :  { %v283_v47 = vsel %vm280_vm7, %v282_v62, %v278_v37  ;;  %v306_v36 = vmul.f32 %v1516_v49, %v264_v45  ;;  %v2899_v49 = vld [vmem:[#allocation26_spill] sm:$0xff]  ;;  %v2903_v0 = vld [vmem:[#allocation29_spill] sm:$0xff]  ;;  %v2905_v45 = vld [vmem:[#allocation31_spill] sm:$0xff] }
  0xd0   :  { %v293_v34 = vmul.f32 %v1514_v54, %v292_v43  ;;  %v305_v61 = vmul.f32 %v283_v47, %v2888_v52  ;;  %v2892_v52 = vld [vmem:[#allocation20_spill] sm:$0xff]  ;;  %v2902_v62 = vld [vmem:[#allocation42_spill] sm:$0xff]  ;;  %v2906_v47 = vld [vmem:[#allocation43_spill] sm:$0xff] }
  0xd1   :  { %v2904_v43 = vld [vmem:[#allocation30_spill] sm:$0xff]  ;;  %v2909_v40 = vld [vmem:[#allocation35_spill] sm:$0xff] }
  0xd2   :  { %v2209_v50 = vadd.f32 %v306_v36, %v305_v61  ;;  %v294_v57 = vadd.f32 %v1514_v54, %v293_v34  ;;  %v2890_v34 = vld [vmem:[#allocation33_spill] sm:$0xff]  ;;  %v2891_v36 = vld [vmem:[#allocation19_spill] sm:$0xff]  ;;  %v2907_v61 = vld [vmem:[#allocation32_spill] sm:$0xff] }
  0xd4   :  { %1517 = vtanh.f32 %v2209_v50  ;;  %v298_v38 = vsel %vm297_vm10, %v1514_v54, %v294_v57  ;;  %v2893_v54 = vld [vmem:[#allocation21_spill] sm:$0xff]  ;;  %v2908_v57 = vld [vmem:[#allocation34_spill] sm:$0xff] }
  0xd5   :  { %v303_v46 = vsel %vm300_vm11, %v302_v53, %v298_v38  ;;  %v2910_v38 = vld [vmem:[#allocation44_spill] sm:$0xff] }
  0xd6   :  { %v2911_v53 = vld [vmem:[#allocation36_spill] sm:$0xff] }
  0xda   :  { %v1518_v56 = vpop.eup %1517 }
  0xdb   :  { %v309_v37 = vmul.f32 %v1518_v56, %v303_v46  ;;  %v2912_v56 = vld [vmem:[#allocation38_spill] sm:$0xff]  ;;  %v2913_v46 = vld [vmem:[#allocation39_spill] sm:$0xff] }
  0xdd   :  { %312 = vst [vmem:[#allocation12] sm:$0xff] %v309_v37  ;;  %340 = vmatmul.f32.vlgmr.msrb.gmra.mxu0 %v309_v37  ;;  %360 = vmatmul.f32.vlgmr.msrb.gmra.mxu1 %v309_v37 }
  0xde   :  { %380 = vmatmul.f32.vlgmr.msrb.gmra.mxu2 %v309_v37  ;;  %400 = vmatmul.f32.vlgmr.msrb.gmra.mxu3 %v309_v37  ;;  %v2914_v37 = vld [vmem:[#allocation45_spill] sm:$0xff] }
  0xdf   :  { %648 = vmatpush.msrb.mxu0 %v2883_v59  ;;  %668 = vmatpush.msrb.mxu1 %v1875_v1 }
  0xe0   :  { %688 = vmatpush.msrb.mxu2 %v1919_v17  ;;  %708 = vmatpush.msrb.mxu3 %v1877_v2 }
  0xe1   :  { %649 = vmatpush.msrb.mxu0 %v1881_v3  ;;  %669 = vmatpush.msrb.mxu1 %v1883_v4 }
  0xe2   :  { %689 = vmatpush.msrb.mxu2 %v1925_v19  ;;  %709 = vmatpush.msrb.mxu3 %v1885_v5 }
  0xe3   :  { %650 = vmatpush.msrb.mxu0 %v1888_v6  ;;  %670 = vmatpush.msrb.mxu1 %v1890_v7 }
  0xe4   :  { %690 = vmatpush.msrb.mxu2 %v1937_v23  ;;  %710 = vmatpush.msrb.mxu3 %v1894_v8 }
  0xe5   :  { %651 = vmatpush.msrb.mxu0 %v1897_v9  ;;  %671 = vmatpush.msrb.mxu1 %v1899_v10 }
  0xe6   :  { %691 = vmatpush.msrb.mxu2 %v1949_v27  ;;  %711 = vmatpush.msrb.mxu3 %v1903_v11 }
  0xe7   :  { %652 = vmatpush.msrb.mxu0 %v1906_v12  ;;  %672 = vmatpush.msrb.mxu1 %v1908_v13 }
  0xe8   :  { %692 = vmatpush.msrb.mxu2 %v1961_v31  ;;  %712 = vmatpush.msrb.mxu3 %v1912_v14 }
  0xe9   :  { %653 = vmatpush.msrb.mxu0 %v1915_v15  ;;  %673 = vmatpush.msrb.mxu1 %v1917_v16 }
  0xea   :  { %693 = vmatpush.msrb.mxu2 %v1973_v35  ;;  %713 = vmatpush.msrb.mxu3 %v1923_v18 }
  0xeb   :  { %654 = vmatpush.msrb.mxu0 %v1928_v20  ;;  %674 = vmatpush.msrb.mxu1 %v1930_v21 }
  0xec   :  { %694 = vmatpush.msrb.mxu2 %v1985_v39  ;;  %714 = vmatpush.msrb.mxu3 %v1935_v22 }
  0xed   :  { %655 = vmatpush.msrb.mxu0 %v1940_v24  ;;  %675 = vmatpush.msrb.mxu1 %v1942_v25 }
  0xee   :  { %695 = vmatpush.msrb.mxu2 %v1999_v44  ;;  %715 = vmatpush.msrb.mxu3 %v1947_v26 }
  0xef   :  { %656 = vmatpush.msrb.mxu0 %v1952_v28  ;;  %676 = vmatpush.msrb.mxu1 %v1954_v29 }
  0xf0   :  { %696 = vmatpush.msrb.mxu2 %v2012_v48  ;;  %716 = vmatpush.msrb.mxu3 %v1959_v30 }
  0xf1   :  { %657 = vmatpush.msrb.mxu0 %v1964_v32  ;;  %677 = vmatpush.msrb.mxu1 %v2889_v33 }
  0xf2   :  { %697 = vmatpush.msrb.mxu2 %v2890_v34  ;;  %717 = vmatpush.msrb.mxu3 %v2891_v36 }
  0xf3   :  { %658 = vmatpush.msrb.mxu0 %v2892_v52  ;;  %678 = vmatpush.msrb.mxu1 %v2893_v54 }
  0xf4   :  { %698 = vmatpush.msrb.mxu2 %v2894_v42  ;;  %718 = vmatpush.msrb.mxu3 %v2895_v63 }
  0xf5   :  { %659 = vmatpush.msrb.mxu0 %v2896_v41  ;;  %679 = vmatpush.msrb.mxu1 %v2897_v55 }
  0xf6   :  { %699 = vmatpush.msrb.mxu2 %v2898_v51  ;;  %719 = vmatpush.msrb.mxu3 %v2899_v49  ;;  %v319_v49 = vld [vmem:[#allocation4 + $0x38] sm:$0xff] }
  0xf7   :  { %660 = vmatpush.msrb.mxu0 %v2900_v58  ;;  %680 = vmatpush.msrb.mxu1 %v2901_v60 }
  0xf8   :  { %700 = vmatpush.msrb.mxu2 %v2902_v62  ;;  %720 = vmatpush.msrb.mxu3 %v2903_v0  ;;  %v2916_v0 = vld [vmem:[#allocation17_spill] sm:$0xff]  ;;  %v2917_v62 = vld [vmem:[#allocation46_spill] sm:$0xff] }
  0xf9   :  { %661 = vmatpush.msrb.mxu0 %v2904_v43  ;;  %681 = vmatpush.msrb.mxu1 %v2905_v45  ;;  %v2915_v43 = vld [vmem:[#allocation40_spill] sm:$0xff] }
  0xfa   :  { %701 = vmatpush.msrb.mxu2 %v2906_v47  ;;  %721 = vmatpush.msrb.mxu3 %v2907_v61  ;;  %v316_v45 = vld [vmem:[#allocation4 + $0x20] sm:$0xff]  ;;  %v317_v47 = vld [vmem:[#allocation4 + $0x28] sm:$0xff] }
  0xfb   :  { %662 = vmatpush.msrb.mxu0 %v2908_v57  ;;  %682 = vmatpush.msrb.mxu1 %v2909_v40  ;;  %v320_v61 = vadd.f32 %v316_v45, %v2916_v0  ;;  %v321_v57 = vadd.f32 %v317_v47, %v2917_v62  ;;  %v318_v47 = vld [vmem:[#allocation4 + $0x30] sm:$0xff] }
  0xfc   :  { %702 = vmatpush.msrb.mxu2 %v2910_v38  ;;  %722 = vmatpush.msrb.mxu3 %v2911_v53 }
  0xfd   :  { %663 = vmatpush.msrb.mxu0 %v2912_v56  ;;  %683 = vmatpush.msrb.mxu1 %v2913_v46  ;;  %v2918_v56 = vld [vmem:[#allocation47_spill] sm:$0xff] }
  0xfe   :  { %703 = vmatpush.msrb.mxu2 %v2914_v37  ;;  %723 = vmatpush.msrb.mxu3 %v2915_v43  ;;  %v323_v55 = vadd.f32 %v319_v49, %v2918_v56 }
 0x15a   :  { %v341_v60 = vpop.f32.mrf.mxu0  ;;  %v361_v40 = vpop.f32.mrf.mxu1 }
 0x15b   :  { %v404_v58 = vadd.f32 %v341_v60, %v320_v61  ;;  %v405_v38 = vadd.f32 %v361_v40, %v321_v57  ;;  %v2919_v60 = vld [vmem:[#allocation48_spill] sm:$0xff] }
 0x15c   :  { %v322_v61 = vadd.f32 %v318_v47, %v2919_v60 }
 0x15d   :  { %v1471_v53 = vmul.f32 -1.442695, %v404_v58  ;;  %v1472_v51 = vmul.f32 -1.442695, %v405_v38 }
 0x15f   :  { %1519 = vpow2.f32 %v1471_v53 }
 0x160   :  { %1521 = vpow2.f32 %v1472_v51 }
 0x161   :  { %v401_v37 = vpop.f32.mrf.mxu3  ;;  %v381_v57 = vpop.f32.mrf.mxu2 }
 0x162   :  { %v407_v46 = vadd.f32 %v401_v37, %v323_v55  ;;  %v406_v49 = vadd.f32 %v381_v57, %v322_v61 }
 0x164   :  { %v1473_v43 = vmul.f32 -1.442695, %v407_v46 }
 0x165   :  { %v1520_v41 = vpop.eup %1519 }
 0x166   :  { %v1522_v63 = vpop.eup %1521  ;;  %v411_v42 = vadd.f32 1.0, %v1520_v41  ;;  %1523 = vpow2.f32 %v1473_v43 }
 0x167   :  { %v430_v45 = vadd.f32 1.0, %v1522_v63 }
 0x168   :  { %1525 = vrcp.f32 %v411_v42  ;;  %v423_v56 = vand.u32 2147483648, %v411_v42  ;;  %v421_v43 = vand.u32 2147483647, %v411_v42  ;;  %vm417_vm14 = vweird.f32 %v411_v42 }
 0x169   :  { %1527 = vrcp.f32 %v430_v45  ;;  %v442_v41 = vand.u32 2147483648, %v430_v45  ;;  %v440_v47 = vand.u32 2147483647, %v430_v45  ;;  %vm436_vm15 = vweird.f32 %v430_v45 }
 0x16a   :  { %v424_v61 = vor.u32 1.1754944e-38, %v423_v56  ;;  %vm422_vm2 = vcmp.eq.f32.partialorder %v421_v43, 8.507059e+37 }
 0x16b   :  { %vm441_vm3 = vcmp.eq.f32.partialorder %v440_v47, 8.507059e+37 }
 0x16c   :  { %v1524_v58 = vpop.eup %1523 }
 0x16d   :  { %v450_v40 = vadd.f32 1.0, %v1524_v58 }
 0x16e   :  { %v1526_v38 = vpop.eup %1525 }
 0x16f   :  { %v1528_v53 = vpop.eup %1527  ;;  %v413_v51 = vmul.f32 %v1526_v38, %v411_v42  ;;  %1529 = vrcp.f32 %v450_v40  ;;  %vm418_vm12 = vweird.f32 %v1526_v38  ;;  %vm456_vm5 = vweird.f32 %v450_v40 }
 0x170   :  { %v432_v55 = vmul.f32 %v1528_v53, %v430_v45  ;;  %1531 = vtanh.f32 %v406_v49  ;;  %vm437_vm13 = vweird.f32 %v1528_v53  ;;  %vm419_vm0 = vmor %vm417_vm14, %vm418_vm12 }
 0x171   :  { %v414_v46 = vsub.f32 1.0, %v413_v51  ;;  %vm438_vm1 = vmor %vm436_vm15, %vm437_vm13  ;;  %v443_v51 = vor.u32 1.1754944e-38, %v442_v41 }
 0x172   :  { %v433_v37 = vsub.f32 1.0, %v432_v55 }
 0x173   :  { %v415_v63 = vmul.f32 %v1526_v38, %v414_v46 }
 0x174   :  { %v434_v62 = vmul.f32 %v1528_v53, %v433_v37 }
 0x175   :  { %v1530_v60 = vpop.eup %1529  ;;  %v416_v0 = vadd.f32 %v1526_v38, %v415_v63 }
 0x176   :  { %v435_v57 = vadd.f32 %v1528_v53, %v434_v62  ;;  %v452_v58 = vmul.f32 %v1530_v60, %v450_v40  ;;  %v1532_v49 = vpop.eup %1531  ;;  %vm457_vm4 = vweird.f32 %v1530_v60  ;;  %v462_v62 = vand.u32 2147483648, %v450_v40 }
 0x177   :  { %v420_v55 = vsel %vm419_vm0, %v1526_v38, %v416_v0  ;;  %v460_v0 = vand.u32 2147483647, %v450_v40  ;;  %vm458_vm6 = vmor %vm456_vm5, %vm457_vm4 }
 0x178   :  { %v425_v54 = vsel %vm422_vm2, %v424_v61, %v420_v55  ;;  %v439_v46 = vsel %vm438_vm1, %v1528_v53, %v435_v57  ;;  %v453_v52 = vsub.f32 1.0, %v452_v58  ;;  %v463_v38 = vor.u32 1.1754944e-38, %v462_v62  ;;  %v480_v58 = vld [vmem:[#allocation4 + $0x50] sm:$0xff] }
 0x179   :  { %v444_v37 = vsel %vm441_vm3, %v443_v51, %v439_v46  ;;  %v467_v36 = vmul.f32 %v1532_v49, %v425_v54  ;;  %vm461_vm7 = vcmp.eq.f32.partialorder %v460_v0, 8.507059e+37  ;;  %v2949_v51 = vld [vmem:[#allocation48_spill] sm:$0xff] }
 0x17a   :  { %v466_v34 = vmul.f32 %v444_v37, %v2209_v50  ;;  %v454_v63 = vmul.f32 %v1530_v60, %v453_v52  ;;  %v484_v55 = vadd.f32 %v480_v58, %v2949_v51  ;;  %v2410_v58 = vld [vmem:[#allocation9 + $0x170] sm:$0xff] }
 0x17c   :  { %v2281_v42 = vadd.f32 %v467_v36, %v466_v34  ;;  %v455_v56 = vadd.f32 %v1530_v60, %v454_v63  ;;  %v2948_v34 = vld [vmem:[#allocation47_spill] sm:$0xff] }
 0x17e   :  { %1533 = vtanh.f32 %v2281_v42  ;;  %v459_v45 = vsel %vm458_vm6, %v1530_v60, %v455_v56 }
 0x17f   :  { %v464_v41 = vsel %vm461_vm7, %v463_v38, %v459_v45 }
 0x184   :  { %v1534_v53 = vpop.eup %1533 }
 0x185   :  { %v470_v43 = vmul.f32 %v1534_v53, %v464_v41 }
 0x187   :  { %474 = vst [vmem:[#allocation12 + $0x8] sm:$0xff] %v470_v43  ;;  %502 = vmatmul.f32.vlgmr.msra.gmra.mxu0 %v470_v43  ;;  %522 = vmatmul.f32.vlgmr.msra.gmra.mxu1 %v470_v43 }
 0x188   :  { %542 = vmatmul.f32.vlgmr.msra.gmra.mxu2 %v470_v43  ;;  %562 = vmatmul.f32.vlgmr.msra.gmra.mxu3 %v470_v43 }
 0x189   :  { %810 = vmatpush.msra.mxu0 %v2883_v59  ;;  %830 = vmatpush.msra.mxu1 %v1875_v1  ;;  %v2920_v1 = vld [vmem:[#allocation33_spill] sm:$0xff]  ;;  %v481_v59 = vld [vmem:[#allocation4 + $0x58] sm:$0xff] }
 0x18a   :  { %850 = vmatpush.msra.mxu2 %v1919_v17  ;;  %870 = vmatpush.msra.mxu3 %v1877_v2  ;;  %v2921_v2 = vld [vmem:[#allocation19_spill] sm:$0xff]  ;;  %v485_v36 = vadd.f32 %v481_v59, %v2948_v34 }
 0x18b   :  { %811 = vmatpush.msra.mxu0 %v1881_v3  ;;  %831 = vmatpush.msra.mxu1 %v1883_v4  ;;  %v2922_v3 = vld [vmem:[#allocation20_spill] sm:$0xff]  ;;  %v2923_v4 = vld [vmem:[#allocation21_spill] sm:$0xff]  ;;  %v2936_v17 = vld [vmem:[#allocation43_spill] sm:$0xff] }
 0x18c   :  { %851 = vmatpush.msra.mxu2 %v1925_v19  ;;  %871 = vmatpush.msra.mxu3 %v1885_v5  ;;  %v2924_v5 = vld [vmem:[#allocation37_spill] sm:$0xff]  ;;  %v2938_v19 = vld [vmem:[#allocation34_spill] sm:$0xff]  ;;  %v2377_v59 = vld [vmem:[#allocation9 + $0x1d8] sm:$0xff] }
 0x18d   :  { %812 = vmatpush.msra.mxu0 %v1888_v6  ;;  %832 = vmatpush.msra.mxu1 %v1890_v7  ;;  %v2925_v6 = vld [vmem:[#allocation22_spill] sm:$0xff]  ;;  %v2926_v7 = vld [vmem:[#allocation23_spill] sm:$0xff] }
 0x18e   :  { %852 = vmatpush.msra.mxu2 %v1937_v23  ;;  %872 = vmatpush.msra.mxu3 %v1894_v8  ;;  %v2927_v8 = vld [vmem:[#allocation24_spill] sm:$0xff]  ;;  %v2942_v23 = vld [vmem:[#allocation38_spill] sm:$0xff] }
 0x18f   :  { %813 = vmatpush.msra.mxu0 %v1897_v9  ;;  %833 = vmatpush.msra.mxu1 %v1899_v10  ;;  %v2928_v9 = vld [vmem:[#allocation41_spill] sm:$0xff]  ;;  %v2929_v10 = vld [vmem:[#allocation26_spill] sm:$0xff] }
 0x190   :  { %853 = vmatpush.msra.mxu2 %v1949_v27  ;;  %873 = vmatpush.msra.mxu3 %v1903_v11  ;;  %v2930_v11 = vld [vmem:[#allocation27_spill] sm:$0xff]  ;;  %v478_v27 = vld [vmem:[#allocation4 + $0x40] sm:$0xff] }
 0x191   :  { %814 = vmatpush.msra.mxu0 %v1906_v12  ;;  %834 = vmatpush.msra.mxu1 %v1908_v13  ;;  %v2931_v12 = vld [vmem:[#allocation28_spill] sm:$0xff]  ;;  %v2932_v13 = vld [vmem:[#allocation42_spill] sm:$0xff] }
 0x192   :  { %854 = vmatpush.msra.mxu2 %v1961_v31  ;;  %874 = vmatpush.msra.mxu3 %v1912_v14  ;;  %v2933_v14 = vld [vmem:[#allocation29_spill] sm:$0xff]  ;;  %v2947_v31 = vld [vmem:[#allocation46_spill] sm:$0xff] }
 0x193   :  { %815 = vmatpush.msra.mxu0 %v1915_v15  ;;  %835 = vmatpush.msra.mxu1 %v1917_v16  ;;  %v2934_v15 = vld [vmem:[#allocation30_spill] sm:$0xff]  ;;  %v2935_v16 = vld [vmem:[#allocation31_spill] sm:$0xff] }
 0x194   :  { %855 = vmatpush.msra.mxu2 %v1973_v35  ;;  %875 = vmatpush.msra.mxu3 %v1923_v18  ;;  %v2937_v18 = vld [vmem:[#allocation32_spill] sm:$0xff] }
 0x195   :  { %816 = vmatpush.msra.mxu0 %v1928_v20  ;;  %836 = vmatpush.msra.mxu1 %v1930_v21  ;;  %v2939_v20 = vld [vmem:[#allocation35_spill] sm:$0xff]  ;;  %v2940_v21 = vld [vmem:[#allocation44_spill] sm:$0xff] }
 0x196   :  { %856 = vmatpush.msra.mxu2 %v1985_v39  ;;  %876 = vmatpush.msra.mxu3 %v1935_v22  ;;  %v2941_v22 = vld [vmem:[#allocation36_spill] sm:$0xff] }
 0x197   :  { %817 = vmatpush.msra.mxu0 %v1940_v24  ;;  %837 = vmatpush.msra.mxu1 %v1942_v25  ;;  %v2943_v24 = vld [vmem:[#allocation39_spill] sm:$0xff]  ;;  %v2944_v25 = vld [vmem:[#allocation45_spill] sm:$0xff] }
 0x198   :  { %857 = vmatpush.msra.mxu2 %v1999_v44  ;;  %877 = vmatpush.msra.mxu3 %v1947_v26  ;;  %v2945_v26 = vld [vmem:[#allocation40_spill] sm:$0xff] }
 0x199   :  { %818 = vmatpush.msra.mxu0 %v1952_v28  ;;  %838 = vmatpush.msra.mxu1 %v1954_v29  ;;  %v479_v28 = vld [vmem:[#allocation4 + $0x48] sm:$0xff] }
 0x19a   :  { %858 = vmatpush.msra.mxu2 %v2012_v48  ;;  %878 = vmatpush.msra.mxu3 %v1959_v30  ;;  %v2946_v29 = vld [vmem:[#allocation17_spill] sm:$0xff] }
 0x19b   :  { %819 = vmatpush.msra.mxu0 %v1964_v32  ;;  %839 = vmatpush.msra.mxu1 %v2889_v33  ;;  %v482_v30 = vadd.f32 %v478_v27, %v2946_v29  ;;  %v483_v32 = vadd.f32 %v479_v28, %v2947_v31 }
 0x19c   :  { %859 = vmatpush.msra.mxu2 %v2920_v1  ;;  %879 = vmatpush.msra.mxu3 %v2921_v2 }
 0x19d   :  { %820 = vmatpush.msra.mxu0 %v2922_v3  ;;  %840 = vmatpush.msra.mxu1 %v2923_v4 }
 0x19e   :  { %860 = vmatpush.msra.mxu2 %v2924_v5  ;;  %880 = vmatpush.msra.mxu3 %v2925_v6 }
 0x19f   :  { %821 = vmatpush.msra.mxu0 %v2926_v7  ;;  %841 = vmatpush.msra.mxu1 %v2927_v8 }
 0x1a0   :  { %861 = vmatpush.msra.mxu2 %v2928_v9  ;;  %881 = vmatpush.msra.mxu3 %v2929_v10 }
 0x1a1   :  { %822 = vmatpush.msra.mxu0 %v2930_v11  ;;  %842 = vmatpush.msra.mxu1 %v2931_v12 }
 0x1a2   :  { %862 = vmatpush.msra.mxu2 %v2932_v13  ;;  %882 = vmatpush.msra.mxu3 %v2933_v14 }
 0x1a3   :  { %823 = vmatpush.msra.mxu0 %v2934_v15  ;;  %843 = vmatpush.msra.mxu1 %v2935_v16 }
 0x1a4   :  { %863 = vmatpush.msra.mxu2 %v2936_v17  ;;  %883 = vmatpush.msra.mxu3 %v2937_v18 }
 0x1a5   :  { %824 = vmatpush.msra.mxu0 %v2938_v19  ;;  %844 = vmatpush.msra.mxu1 %v2939_v20 }
 0x1a6   :  { %864 = vmatpush.msra.mxu2 %v2940_v21  ;;  %884 = vmatpush.msra.mxu3 %v2941_v22 }
 0x1a7   :  { %825 = vmatpush.msra.mxu0 %v2942_v23  ;;  %845 = vmatpush.msra.mxu1 %v2943_v24 }
 0x1a8   :  { %865 = vmatpush.msra.mxu2 %v2944_v25  ;;  %885 = vmatpush.msra.mxu3 %v2945_v26 }
 0x204   :  { %v503_v35 = vpop.f32.mrf.mxu0  ;;  %v523_v39 = vpop.f32.mrf.mxu1 }
 0x205   :  { %v566_v44 = vadd.f32 %v503_v35, %v482_v30  ;;  %v567_v48 = vadd.f32 %v523_v39, %v483_v32  ;;  %v2359_v30 = vld [vmem:[#allocation9 + $0x1e8] sm:$0xff]  ;;  %v2362_v32 = vld [vmem:[#allocation9 + $0x1f0] sm:$0xff]  ;;  %v2365_v35 = vld [vmem:[#allocation9 + $0x1f8] sm:$0xff] }
 0x206   :  { %v2368_v39 = vld [vmem:[#allocation9 + $0x1c0] sm:$0xff] }
 0x207   :  { %v1474_v50 = vmul.f32 -1.442695, %v566_v44  ;;  %v1475_v33 = vmul.f32 -1.442695, %v567_v48  ;;  %v2371_v44 = vld [vmem:[#allocation9 + $0x1c8] sm:$0xff]  ;;  %v2374_v48 = vld [vmem:[#allocation9 + $0x1d0] sm:$0xff] }
 0x209   :  { %1535 = vpow2.f32 %v1474_v50  ;;  %v2380_v50 = vld [vmem:[#allocation9 + $0x1a0] sm:$0xff] }
 0x20a   :  { %1537 = vpow2.f32 %v1475_v33  ;;  %v2383_v33 = vld [vmem:[#allocation9 + $0x1a8] sm:$0xff] }
 0x20b   :  { %v563_v52 = vpop.f32.mrf.mxu3  ;;  %v543_v49 = vpop.f32.mrf.mxu2 }
 0x20c   :  { %v569_v54 = vadd.f32 %v563_v52, %v485_v36  ;;  %v568_v56 = vadd.f32 %v543_v49, %v484_v55  ;;  %v2386_v36 = vld [vmem:[#allocation9 + $0x1b0] sm:$0xff]  ;;  %v2389_v52 = vld [vmem:[#allocation9 + $0x1b8] sm:$0xff]  ;;  %v2416_v49 = vld [vmem:[#allocation9 + $0x140] sm:$0xff] }
 0x20d   :  { %v2413_v55 = vld [vmem:[#allocation9 + $0x178] sm:$0xff] }
 0x20e   :  { %v1476_v60 = vmul.f32 -1.442695, %v569_v54  ;;  %v2392_v54 = vld [vmem:[#allocation9 + $0x180] sm:$0xff] }
 0x20f   :  { %v1536_v40 = vpop.eup %1535 }
 0x210   :  { %v1538_v47 = vpop.eup %1537  ;;  %v573_v61 = vadd.f32 1.0, %v1536_v40  ;;  %1539 = vpow2.f32 %v1476_v60  ;;  %v2395_v60 = vld [vmem:[#allocation9 + $0x188] sm:$0xff]  ;;  %v2398_v40 = vld [vmem:[#allocation9 + $0x190] sm:$0xff] }
 0x211   :  { %v592_v57 = vadd.f32 1.0, %v1538_v47  ;;  %v2401_v47 = vld [vmem:[#allocation9 + $0x198] sm:$0xff] }
 0x212   :  { %1541 = vrcp.f32 %v573_v61  ;;  %v585_v41 = vand.u32 2147483648, %v573_v61  ;;  %v583_v2 = vand.u32 2147483647, %v573_v61  ;;  %vm579_vm10 = vweird.f32 %v573_v61 }
 0x213   :  { %1543 = vrcp.f32 %v592_v57  ;;  %v604_v43 = vand.u32 2147483648, %v592_v57  ;;  %v602_v4 = vand.u32 2147483647, %v592_v57  ;;  %vm598_vm11 = vweird.f32 %v592_v57 }
 0x214   :  { %v586_v7 = vor.u32 1.1754944e-38, %v585_v41  ;;  %vm584_vm14 = vcmp.eq.f32.partialorder %v583_v2, 8.507059e+37  ;;  %v2446_v41 = vld [vmem:[#allocation9 + $0x110] sm:$0xff]  ;;  %v2455_v2 = vld [vmem:[#allocation9 + $0xe8] sm:$0xff] }
 0x215   :  { %v605_v10 = vor.u32 1.1754944e-38, %v604_v43  ;;  %vm603_vm15 = vcmp.eq.f32.partialorder %v602_v4, 8.507059e+37  ;;  %v2449_v43 = vld [vmem:[#allocation9 + $0x118] sm:$0xff] }
 0x216   :  { %v1540_v46 = vpop.eup %1539  ;;  %v2461_v4 = vld [vmem:[#allocation9 + $0xf8] sm:$0xff] }
 0x217   :  { %v612_v37 = vadd.f32 1.0, %v1540_v46  ;;  %v2419_v46 = vld [vmem:[#allocation9 + $0x148] sm:$0xff] }
 0x218   :  { %v1542_v63 = vpop.eup %1541 }
 0x219   :  { %v1544_v62 = vpop.eup %1543  ;;  %v575_v0 = vmul.f32 %v1542_v63, %v573_v61  ;;  %1545 = vrcp.f32 %v612_v37  ;;  %vm580_vm8 = vweird.f32 %v1542_v63  ;;  %v624_v22 = vand.u32 2147483648, %v612_v37  ;;  %v2404_v61 = vld [vmem:[#allocation9 + $0x160] sm:$0xff] }
 0x21a   :  { %v594_v45 = vmul.f32 %v1544_v62, %v592_v57  ;;  %1547 = vtanh.f32 %v568_v56  ;;  %vm599_vm9 = vweird.f32 %v1544_v62  ;;  %vm581_vm12 = vmor %vm579_vm10, %vm580_vm8  ;;  %vm618_vm1 = vweird.f32 %v612_v37  ;;  %v2407_v57 = vld [vmem:[#allocation9 + $0x168] sm:$0xff]  ;;  %v2428_v56 = vld [vmem:[#allocation9 + $0x120] sm:$0xff] }
 0x21b   :  { %v576_v38 = vsub.f32 1.0, %v575_v0  ;;  %vm600_vm13 = vmor %vm598_vm11, %vm599_vm9  ;;  %v622_v23 = vand.u32 2147483647, %v612_v37  ;;  %v625_v25 = vor.u32 1.1754944e-38, %v624_v22  ;;  %v2434_v0 = vld [vmem:[#allocation9 + $0x130] sm:$0xff]  ;;  %v2512_v22 = vld [vmem:[#allocation9 + $0x40] sm:$0xff] }
 0x21c   :  { %v595_v53 = vsub.f32 1.0, %v594_v45  ;;  %v2437_v45 = vld [vmem:[#allocation9 + $0x138] sm:$0xff]  ;;  %2964 = vst [vmem:[#allocation42_spill] sm:$0xff] %v2512_v22 }
 0x21d   :  { %v577_v1 = vmul.f32 %v1542_v63, %v576_v38  ;;  %vm623_vm3 = vcmp.eq.f32.partialorder %v622_v23, 8.507059e+37  ;;  %v2440_v38 = vld [vmem:[#allocation9 + $0x100] sm:$0xff]  ;;  %v2515_v23 = vld [vmem:[#allocation9 + $0x48] sm:$0xff] }
 0x21e   :  { %v596_v3 = vmul.f32 %v1544_v62, %v595_v53  ;;  %v2443_v53 = vld [vmem:[#allocation9 + $0x108] sm:$0xff]  ;;  %2965 = vst [vmem:[#allocation29_spill] sm:$0xff] %v2515_v23 }
 0x21f   :  { %v1546_v5 = vpop.eup %1545  ;;  %v578_v6 = vadd.f32 %v1542_v63, %v577_v1  ;;  %v2452_v1 = vld [vmem:[#allocation9 + $0xe0] sm:$0xff] }
 0x220   :  { %v597_v8 = vadd.f32 %v1544_v62, %v596_v3  ;;  %v614_v9 = vmul.f32 %v1546_v5, %v612_v37  ;;  %v1548_v12 = vpop.eup %1547  ;;  %vm619_vm0 = vweird.f32 %v1546_v5  ;;  %v2422_v37 = vld [vmem:[#allocation9 + $0x150] sm:$0xff] }
 0x221   :  { %v582_v11 = vsel %vm581_vm12, %v1542_v63, %v578_v6  ;;  %vm620_vm2 = vmor %vm618_vm1, %vm619_vm0  ;;  %v2425_v63 = vld [vmem:[#allocation9 + $0x158] sm:$0xff]  ;;  %v2458_v3 = vld [vmem:[#allocation9 + $0xf0] sm:$0xff] }
 0x222   :  { %v587_v13 = vsel %vm584_vm14, %v586_v7, %v582_v11  ;;  %v601_v14 = vsel %vm600_vm13, %v1544_v62, %v597_v8  ;;  %v615_v15 = vsub.f32 1.0, %v614_v9  ;;  %v2431_v62 = vld [vmem:[#allocation9 + $0x128] sm:$0xff]  ;;  %v2470_v7 = vld [vmem:[#allocation9 + $0xd0] sm:$0xff]  ;;  %v2473_v8 = vld [vmem:[#allocation9 + $0xd8] sm:$0xff] }
 0x223   :  { %v606_v16 = vsel %vm603_vm15, %v605_v10, %v601_v14  ;;  %v629_v17 = vmul.f32 %v1548_v12, %v587_v13  ;;  %v2467_v6 = vld [vmem:[#allocation9 + $0xc8] sm:$0xff]  ;;  %2950 = vst [vmem:[#allocation25_spill] sm:$0xff] %v2470_v7  ;;  %v2476_v9 = vld [vmem:[#allocation9 + $0xa0] sm:$0xff]  ;;  %v2482_v11 = vld [vmem:[#allocation9 + $0xb0] sm:$0xff] }
 0x224   :  { %v628_v18 = vmul.f32 %v606_v16, %v2281_v42  ;;  %v616_v19 = vmul.f32 %v1546_v5, %v615_v15  ;;  %v2356_v42 = vld [vmem:[#allocation9 + $0x1e0] sm:$0xff]  ;;  %2951 = vst [vmem:[#allocation18_spill] sm:$0xff] %v2473_v8  ;;  %v2479_v10 = vld [vmem:[#allocation9 + $0xa8] sm:$0xff]  ;;  %v2485_v12 = vld [vmem:[#allocation9 + $0xb8] sm:$0xff] }
 0x225   :  { %2952 = vst [vmem:[#allocation33_spill] sm:$0xff] %v2476_v9  ;;  %v2488_v13 = vld [vmem:[#allocation9 + $0x80] sm:$0xff]  ;;  %v2491_v14 = vld [vmem:[#allocation9 + $0x88] sm:$0xff]  ;;  %v2494_v15 = vld [vmem:[#allocation9 + $0x90] sm:$0xff] }
 0x226   :  { %v2353_v20 = vadd.f32 %v629_v17, %v628_v18  ;;  %v617_v21 = vadd.f32 %v1546_v5, %v616_v19  ;;  %2953 = vst [vmem:[#allocation19_spill] sm:$0xff] %v2479_v10  ;;  %v2497_v16 = vld [vmem:[#allocation9 + $0x98] sm:$0xff]  ;;  %v2500_v17 = vld [vmem:[#allocation9 + $0x60] sm:$0xff]  ;;  %v2503_v18 = vld [vmem:[#allocation9 + $0x68] sm:$0xff] }
 0x227   :  { %2954 = vst [vmem:[#allocation20_spill] sm:$0xff] %v2482_v11  ;;  %v2506_v19 = vld [vmem:[#allocation9 + $0x70] sm:$0xff] }
 0x228   :  { %1549 = vtanh.f32 %v2353_v20  ;;  %v621_v24 = vsel %vm620_vm2, %v1546_v5, %v617_v21  ;;  %v2464_v5 = vld [vmem:[#allocation9 + $0xc0] sm:$0xff]  ;;  %2955 = vst [vmem:[#allocation21_spill] sm:$0xff] %v2485_v12  ;;  %v2509_v21 = vld [vmem:[#allocation9 + $0x78] sm:$0xff] }
 0x229   :  { %v626_v27 = vsel %vm623_vm3, %v625_v25, %v621_v24  ;;  %2956 = vst [vmem:[#allocation37_spill] sm:$0xff] %v2488_v13  ;;  %v2518_v24 = vld [vmem:[#allocation9 + $0x50] sm:$0xff]  ;;  %v2521_v25 = vld [vmem:[#allocation9 + $0x58] sm:$0xff] }
 0x22a   :  { %2957 = vst [vmem:[#allocation22_spill] sm:$0xff] %v2491_v14 }
 0x22b   :  { %2958 = vst [vmem:[#allocation23_spill] sm:$0xff] %v2494_v15 }
 0x22c   :  { %2959 = vst [vmem:[#allocation24_spill] sm:$0xff] %v2497_v16 }
 0x22d   :  { %2960 = vst [vmem:[#allocation41_spill] sm:$0xff] %v2500_v17 }
 0x22e   :  { %v1550_v26 = vpop.eup %1549  ;;  %2961 = vst [vmem:[#allocation26_spill] sm:$0xff] %v2503_v18 }
 0x22f   :  { %v632_v28 = vmul.f32 %v1550_v26, %v626_v27  ;;  %2962 = vst [vmem:[#allocation27_spill] sm:$0xff] %v2506_v19  ;;  %v2524_v26 = vld [vmem:[#allocation9 + $0x20] sm:$0xff]  ;;  %v2527_v27 = vld [vmem:[#allocation9 + $0x28] sm:$0xff] }
 0x230   :  { %2963 = vst [vmem:[#allocation28_spill] sm:$0xff] %v2509_v21 }
 0x231   :  { %636 = vst [vmem:[#allocation12 + $0x10] sm:$0xff] %v632_v28  ;;  %664 = vmatmul.f32.vlgmr.msrb.gmra.mxu0 %v632_v28  ;;  %684 = vmatmul.f32.vlgmr.msrb.gmra.mxu1 %v632_v28 }
 0x232   :  { %704 = vmatmul.f32.vlgmr.msrb.gmra.mxu2 %v632_v28  ;;  %724 = vmatmul.f32.vlgmr.msrb.gmra.mxu3 %v632_v28  ;;  %2966 = vst [vmem:[#allocation30_spill] sm:$0xff] %v2518_v24  ;;  %v2530_v28 = vld [vmem:[#allocation9 + $0x30] sm:$0xff] }
 0x233   :  { %972 = vmatpush.msrb.mxu0 %v2356_v42  ;;  %992 = vmatpush.msrb.mxu1 %v2359_v30  ;;  %2967 = vst [vmem:[#allocation31_spill] sm:$0xff] %v2521_v25 }
 0x234   :  { %1012 = vmatpush.msrb.mxu2 %v2362_v32  ;;  %1032 = vmatpush.msrb.mxu3 %v2365_v35  ;;  %2968 = vst [vmem:[#allocation43_spill] sm:$0xff] %v2524_v26 }
 0x235   :  { %973 = vmatpush.msrb.mxu0 %v2368_v39  ;;  %993 = vmatpush.msrb.mxu1 %v2371_v44  ;;  %2969 = vst [vmem:[#allocation32_spill] sm:$0xff] %v2527_v27 }
 0x236   :  { %1013 = vmatpush.msrb.mxu2 %v2374_v48  ;;  %1033 = vmatpush.msrb.mxu3 %v2377_v59  ;;  %2970 = vst [vmem:[#allocation34_spill] sm:$0xff] %v2530_v28 }
 0x237   :  { %974 = vmatpush.msrb.mxu0 %v2380_v50  ;;  %994 = vmatpush.msrb.mxu1 %v2383_v33 }
 0x238   :  { %1014 = vmatpush.msrb.mxu2 %v2386_v36  ;;  %1034 = vmatpush.msrb.mxu3 %v2389_v52 }
 0x239   :  { %975 = vmatpush.msrb.mxu0 %v2392_v54  ;;  %995 = vmatpush.msrb.mxu1 %v2395_v60 }
 0x23a   :  { %1015 = vmatpush.msrb.mxu2 %v2398_v40  ;;  %1035 = vmatpush.msrb.mxu3 %v2401_v47 }
 0x23b   :  { %976 = vmatpush.msrb.mxu0 %v2404_v61  ;;  %996 = vmatpush.msrb.mxu1 %v2407_v57 }
 0x23c   :  { %1016 = vmatpush.msrb.mxu2 %v2410_v58  ;;  %1036 = vmatpush.msrb.mxu3 %v2413_v55 }
 0x23d   :  { %977 = vmatpush.msrb.mxu0 %v2416_v49  ;;  %997 = vmatpush.msrb.mxu1 %v2419_v46 }
 0x23e   :  { %1017 = vmatpush.msrb.mxu2 %v2422_v37  ;;  %1037 = vmatpush.msrb.mxu3 %v2425_v63 }
 0x23f   :  { %978 = vmatpush.msrb.mxu0 %v2428_v56  ;;  %998 = vmatpush.msrb.mxu1 %v2431_v62 }
 0x240   :  { %1018 = vmatpush.msrb.mxu2 %v2434_v0  ;;  %1038 = vmatpush.msrb.mxu3 %v2437_v45 }
 0x241   :  { %979 = vmatpush.msrb.mxu0 %v2440_v38  ;;  %999 = vmatpush.msrb.mxu1 %v2443_v53 }
 0x242   :  { %1019 = vmatpush.msrb.mxu2 %v2446_v41  ;;  %1039 = vmatpush.msrb.mxu3 %v2449_v43 }
 0x243   :  { %980 = vmatpush.msrb.mxu0 %v2452_v1  ;;  %1000 = vmatpush.msrb.mxu1 %v2455_v2 }
 0x244   :  { %1020 = vmatpush.msrb.mxu2 %v2458_v3  ;;  %1040 = vmatpush.msrb.mxu3 %v2461_v4 }
 0x245   :  { %981 = vmatpush.msrb.mxu0 %v2464_v5  ;;  %1001 = vmatpush.msrb.mxu1 %v2467_v6 }
 0x246   :  { %1021 = vmatpush.msrb.mxu2 %v2470_v7  ;;  %1041 = vmatpush.msrb.mxu3 %v2473_v8 }
 0x247   :  { %982 = vmatpush.msrb.mxu0 %v2476_v9  ;;  %1002 = vmatpush.msrb.mxu1 %v2479_v10 }
 0x248   :  { %1022 = vmatpush.msrb.mxu2 %v2482_v11  ;;  %1042 = vmatpush.msrb.mxu3 %v2485_v12 }
 0x249   :  { %983 = vmatpush.msrb.mxu0 %v2488_v13  ;;  %1003 = vmatpush.msrb.mxu1 %v2491_v14 }
 0x24a   :  { %1023 = vmatpush.msrb.mxu2 %v2494_v15  ;;  %1043 = vmatpush.msrb.mxu3 %v2497_v16  ;;  %v643_v16 = vld [vmem:[#allocation4 + $0x78] sm:$0xff] }
 0x24b   :  { %984 = vmatpush.msrb.mxu0 %v2500_v17  ;;  %1004 = vmatpush.msrb.mxu1 %v2503_v18  ;;  %v647_v14 = vadd.f32 %v643_v16, %v2948_v34 }
 0x24c   :  { %1024 = vmatpush.msrb.mxu2 %v2506_v19  ;;  %1044 = vmatpush.msrb.mxu3 %v2509_v21 }
 0x24d   :  { %985 = vmatpush.msrb.mxu0 %v2512_v22  ;;  %1005 = vmatpush.msrb.mxu1 %v2515_v23  ;;  %v2533_v23 = vld [vmem:[#allocation9 + $0x38] sm:$0xff]  ;;  %v641_v22 = vld [vmem:[#allocation4 + $0x68] sm:$0xff] }
 0x24e   :  { %1025 = vmatpush.msrb.mxu2 %v2518_v24  ;;  %1045 = vmatpush.msrb.mxu3 %v2521_v25  ;;  %2971 = vst [vmem:[#allocation35_spill] sm:$0xff] %v2533_v23  ;;  %v2536_v24 = vld [vmem:[#allocation9] sm:$0xff]  ;;  %v2539_v25 = vld [vmem:[#allocation9 + $0x8] sm:$0xff]  ;;  %v645_v21 = vadd.f32 %v641_v22, %v2947_v31  ;;  %v642_v31 = vld [vmem:[#allocation4 + $0x70] sm:$0xff] }
 0x24f   :  { %986 = vmatpush.msrb.mxu0 %v2524_v26  ;;  %1006 = vmatpush.msrb.mxu1 %v2527_v27  ;;  %2972 = vst [vmem:[#allocation44_spill] sm:$0xff] %v2536_v24  ;;  %v2542_v26 = vld [vmem:[#allocation9 + $0x10] sm:$0xff]  ;;  %v2545_v27 = vld [vmem:[#allocation9 + $0x18] sm:$0xff] }
 0x250   :  { %1026 = vmatpush.msrb.mxu2 %v2530_v28  ;;  %1046 = vmatpush.msrb.mxu3 %v2533_v23  ;;  %2973 = vst [vmem:[#allocation36_spill] sm:$0xff] %v2539_v25  ;;  %v640_v28 = vld [vmem:[#allocation4 + $0x60] sm:$0xff] }
 0x251   :  { %987 = vmatpush.msrb.mxu0 %v2536_v24  ;;  %1007 = vmatpush.msrb.mxu1 %v2539_v25  ;;  %2974 = vst [vmem:[#allocation38_spill] sm:$0xff] %v2542_v26  ;;  %v644_v23 = vadd.f32 %v640_v28, %v2946_v29 }
 0x252   :  { %1027 = vmatpush.msrb.mxu2 %v2542_v26  ;;  %2975 = vst [vmem:[#allocation39_spill] sm:$0xff] %v2545_v27  ;;  %1047 = vmatpush.msrb.mxu3 %v2545_v27 }
 0x2ae   :  { %v665_v19 = vpop.f32.mrf.mxu0  ;;  %v685_v24 = vpop.f32.mrf.mxu1 }
 0x2af   :  { %v728_v18 = vadd.f32 %v665_v19, %v644_v23  ;;  %v729_v17 = vadd.f32 %v685_v24, %v645_v21  ;;  %v646_v19 = vadd.f32 %v642_v31, %v2949_v51 }
 0x2b1   :  { %v1477_v25 = vmul.f32 -1.442695, %v728_v18  ;;  %v1478_v15 = vmul.f32 -1.442695, %v729_v17 }
 0x2b3   :  { %1551 = vpow2.f32 %v1477_v25 }
 0x2b4   :  { %1553 = vpow2.f32 %v1478_v15 }
 0x2b5   :  { %v725_v26 = vpop.f32.mrf.mxu3  ;;  %v705_v21 = vpop.f32.mrf.mxu2 }
 0x2b6   :  { %v731_v13 = vadd.f32 %v725_v26, %v647_v14  ;;  %v730_v34 = vadd.f32 %v705_v21, %v646_v19 }
 0x2b8   :  { %v1479_v27 = vmul.f32 -1.442695, %v731_v13 }
 0x2b9   :  { %v1552_v12 = vpop.eup %1551 }
 0x2ba   :  { %v1554_v11 = vpop.eup %1553  ;;  %v735_v10 = vadd.f32 1.0, %v1552_v12  ;;  %1555 = vpow2.f32 %v1479_v27 }
 0x2bb   :  { %v754_v29 = vadd.f32 1.0, %v1554_v11 }
 0x2bc   :  { %1557 = vrcp.f32 %v735_v10  ;;  %v747_v24 = vand.u32 2147483648, %v735_v10  ;;  %v745_v25 = vand.u32 2147483647, %v735_v10  ;;  %vm741_vm6 = vweird.f32 %v735_v10 }
 0x2bd   :  { %1559 = vrcp.f32 %v754_v29  ;;  %v766_v12 = vand.u32 2147483648, %v754_v29  ;;  %v764_v51 = vand.u32 2147483647, %v754_v29  ;;  %vm760_vm7 = vweird.f32 %v754_v29 }
 0x2be   :  { %v748_v31 = vor.u32 1.1754944e-38, %v747_v24  ;;  %vm746_vm10 = vcmp.eq.f32.partialorder %v745_v25, 8.507059e+37 }
 0x2bf   :  { %vm765_vm11 = vcmp.eq.f32.partialorder %v764_v51, 8.507059e+37 }
 0x2c0   :  { %v1556_v18 = vpop.eup %1555 }
 0x2c1   :  { %v774_v17 = vadd.f32 1.0, %v1556_v18  ;;  %v767_v18 = vor.u32 1.1754944e-38, %v766_v12 }
 0x2c2   :  { %v1558_v22 = vpop.eup %1557 }
 0x2c3   :  { %v1560_v16 = vpop.eup %1559  ;;  %v737_v15 = vmul.f32 %v1558_v22, %v735_v10  ;;  %1561 = vrcp.f32 %v774_v17  ;;  %vm742_vm4 = vweird.f32 %v1558_v22  ;;  %v786_v24 = vand.u32 2147483648, %v774_v17 }
 0x2c4   :  { %v756_v14 = vmul.f32 %v1560_v16, %v754_v29  ;;  %1563 = vtanh.f32 %v730_v34  ;;  %vm761_vm5 = vweird.f32 %v1560_v16  ;;  %vm743_vm8 = vmor %vm741_vm6, %vm742_vm4  ;;  %vm780_vm13 = vweird.f32 %v774_v17 }
 0x2c5   :  { %v738_v13 = vsub.f32 1.0, %v737_v15  ;;  %vm762_vm9 = vmor %vm760_vm7, %vm761_vm5  ;;  %v787_v25 = vor.u32 1.1754944e-38, %v786_v24  ;;  %v2994_v24 = vld [vmem:[#allocation43_spill] sm:$0xff] }
 0x2c6   :  { %v757_v23 = vsub.f32 1.0, %v756_v14 }
 0x2c7   :  { %v739_v11 = vmul.f32 %v1558_v22, %v738_v13 }
 0x2c8   :  { %v758_v26 = vmul.f32 %v1560_v16, %v757_v23 }
 0x2c9   :  { %v1562_v27 = vpop.eup %1561  ;;  %v740_v28 = vadd.f32 %v1558_v22, %v739_v11 }
 0x2ca   :  { %v759_v19 = vadd.f32 %v1560_v16, %v758_v26  ;;  %v776_v21 = vmul.f32 %v1562_v27, %v774_v17  ;;  %v1564_v34 = vpop.eup %1563  ;;  %vm781_vm12 = vweird.f32 %v1562_v27 }
 0x2cb   :  { %v744_v15 = vsel %vm743_vm8, %v1558_v22, %v740_v28  ;;  %v784_v22 = vand.u32 2147483647, %v774_v17  ;;  %vm782_vm14 = vmor %vm780_vm13, %vm781_vm12  ;;  %v2980_v17 = vld [vmem:[#allocation20_spill] sm:$0xff]  ;;  %v2982_v28 = vld [vmem:[#allocation37_spill] sm:$0xff] }
 0x2cc   :  { %v749_v14 = vsel %vm746_vm10, %v748_v31, %v744_v15  ;;  %v763_v13 = vsel %vm762_vm9, %v1560_v16, %v759_v19  ;;  %v777_v9 = vsub.f32 1.0, %v776_v21  ;;  %v2983_v31 = vld [vmem:[#allocation22_spill] sm:$0xff]  ;;  %v2984_v19 = vld [vmem:[#allocation23_spill] sm:$0xff]  ;;  %v2985_v21 = vld [vmem:[#allocation24_spill] sm:$0xff] }
 0x2cd   :  { %v768_v23 = vsel %vm765_vm11, %v767_v18, %v763_v13  ;;  %v791_v8 = vmul.f32 %v1564_v34, %v749_v14  ;;  %vm785_vm15 = vcmp.eq.f32.partialorder %v784_v22, 8.507059e+37  ;;  %v2986_v18 = vld [vmem:[#allocation41_spill] sm:$0xff]  ;;  %v2987_v15 = vld [vmem:[#allocation26_spill] sm:$0xff]  ;;  %v2988_v34 = vld [vmem:[#allocation27_spill] sm:$0xff] }
 0x2ce   :  { %v790_v7 = vmul.f32 %v768_v23, %v2353_v20  ;;  %v778_v11 = vmul.f32 %v1562_v27, %v777_v9  ;;  %v2976_v20 = vld [vmem:[#allocation25_spill] sm:$0xff]  ;;  %v2979_v9 = vld [vmem:[#allocation19_spill] sm:$0xff]  ;;  %v2989_v14 = vld [vmem:[#allocation28_spill] sm:$0xff] }
 0x2cf   :  { %v2990_v13 = vld [vmem:[#allocation42_spill] sm:$0xff]  ;;  %v2991_v23 = vld [vmem:[#allocation29_spill] sm:$0xff]  ;;  %v2995_v22 = vld [vmem:[#allocation32_spill] sm:$0xff] }
 0x2d0   :  { %v2553_v10 = vadd.f32 %v791_v8, %v790_v7  ;;  %v779_v29 = vadd.f32 %v1562_v27, %v778_v11  ;;  %v2977_v7 = vld [vmem:[#allocation18_spill] sm:$0xff]  ;;  %v2978_v8 = vld [vmem:[#allocation33_spill] sm:$0xff] }
 0x2d1   :  { %v2992_v11 = vld [vmem:[#allocation30_spill] sm:$0xff] }
 0x2d2   :  { %1565 = vtanh.f32 %v2553_v10  ;;  %v783_v12 = vsel %vm782_vm14, %v1562_v27, %v779_v29  ;;  %v2981_v27 = vld [vmem:[#allocation21_spill] sm:$0xff]  ;;  %v2993_v29 = vld [vmem:[#allocation31_spill] sm:$0xff] }
 0x2d3   :  { %v788_v26 = vsel %vm785_vm15, %v787_v25, %v783_v12  ;;  %v2996_v12 = vld [vmem:[#allocation34_spill] sm:$0xff]  ;;  %v2997_v25 = vld [vmem:[#allocation35_spill] sm:$0xff] }
 0x2d8   :  { %v1566_v16 = vpop.eup %1565 }
 0x2d9   :  { %v794_v51 = vmul.f32 %v1566_v16, %v788_v26  ;;  %v2998_v16 = vld [vmem:[#allocation44_spill] sm:$0xff] }
 0x2da   :  { %v2999_v26 = vld [vmem:[#allocation36_spill] sm:$0xff] }
 0x2db   :  { %798 = vst [vmem:[#allocation12 + $0x18] sm:$0xff] %v794_v51  ;;  %826 = vmatmul.f32.vlgmr.msra.gmra.mxu0 %v794_v51  ;;  %846 = vmatmul.f32.vlgmr.msra.gmra.mxu1 %v794_v51 }
 0x2dc   :  { %866 = vmatmul.f32.vlgmr.msra.gmra.mxu2 %v794_v51  ;;  %886 = vmatmul.f32.vlgmr.msra.gmra.mxu3 %v794_v51  ;;  %v3000_v51 = vld [vmem:[#allocation38_spill] sm:$0xff] }
 0x2dd   :  { %1134 = vmatpush.msra.mxu0 %v2356_v42  ;;  %1154 = vmatpush.msra.mxu1 %v2359_v30 }
 0x2de   :  { %1174 = vmatpush.msra.mxu2 %v2362_v32  ;;  %1194 = vmatpush.msra.mxu3 %v2365_v35 }
 0x2df   :  { %1135 = vmatpush.msra.mxu0 %v2368_v39  ;;  %1155 = vmatpush.msra.mxu1 %v2371_v44 }
 0x2e0   :  { %1175 = vmatpush.msra.mxu2 %v2374_v48  ;;  %1195 = vmatpush.msra.mxu3 %v2377_v59 }
 0x2e1   :  { %1136 = vmatpush.msra.mxu0 %v2380_v50  ;;  %1156 = vmatpush.msra.mxu1 %v2383_v33 }
 0x2e2   :  { %1176 = vmatpush.msra.mxu2 %v2386_v36  ;;  %1196 = vmatpush.msra.mxu3 %v2389_v52 }
 0x2e3   :  { %1137 = vmatpush.msra.mxu0 %v2392_v54  ;;  %1157 = vmatpush.msra.mxu1 %v2395_v60 }
 0x2e4   :  { %1177 = vmatpush.msra.mxu2 %v2398_v40  ;;  %1197 = vmatpush.msra.mxu3 %v2401_v47 }
 0x2e5   :  { %1138 = vmatpush.msra.mxu0 %v2404_v61  ;;  %1158 = vmatpush.msra.mxu1 %v2407_v57 }
 0x2e6   :  { %1178 = vmatpush.msra.mxu2 %v2410_v58  ;;  %1198 = vmatpush.msra.mxu3 %v2413_v55 }
 0x2e7   :  { %1139 = vmatpush.msra.mxu0 %v2416_v49  ;;  %1159 = vmatpush.msra.mxu1 %v2419_v46 }
 0x2e8   :  { %1179 = vmatpush.msra.mxu2 %v2422_v37  ;;  %1199 = vmatpush.msra.mxu3 %v2425_v63 }
 0x2e9   :  { %1140 = vmatpush.msra.mxu0 %v2428_v56  ;;  %1160 = vmatpush.msra.mxu1 %v2431_v62 }
 0x2ea   :  { %1180 = vmatpush.msra.mxu2 %v2434_v0  ;;  %1200 = vmatpush.msra.mxu3 %v2437_v45 }
 0x2eb   :  { %1141 = vmatpush.msra.mxu0 %v2440_v38  ;;  %1161 = vmatpush.msra.mxu1 %v2443_v53 }
 0x2ec   :  { %1181 = vmatpush.msra.mxu2 %v2446_v41  ;;  %1201 = vmatpush.msra.mxu3 %v2449_v43 }
 0x2ed   :  { %1142 = vmatpush.msra.mxu0 %v2452_v1  ;;  %1162 = vmatpush.msra.mxu1 %v2455_v2 }
 0x2ee   :  { %1182 = vmatpush.msra.mxu2 %v2458_v3  ;;  %1202 = vmatpush.msra.mxu3 %v2461_v4 }
 0x2ef   :  { %1143 = vmatpush.msra.mxu0 %v2464_v5  ;;  %1163 = vmatpush.msra.mxu1 %v2467_v6 }
 0x2f0   :  { %1183 = vmatpush.msra.mxu2 %v2976_v20  ;;  %1203 = vmatpush.msra.mxu3 %v2977_v7 }
 0x2f1   :  { %1144 = vmatpush.msra.mxu0 %v2978_v8  ;;  %1164 = vmatpush.msra.mxu1 %v2979_v9 }
 0x2f2   :  { %1184 = vmatpush.msra.mxu2 %v2980_v17  ;;  %1204 = vmatpush.msra.mxu3 %v2981_v27 }
 0x2f3   :  { %1145 = vmatpush.msra.mxu0 %v2982_v28  ;;  %1165 = vmatpush.msra.mxu1 %v2983_v31 }
 0x2f4   :  { %1185 = vmatpush.msra.mxu2 %v2984_v19  ;;  %1205 = vmatpush.msra.mxu3 %v2985_v21 }
 0x2f5   :  { %1146 = vmatpush.msra.mxu0 %v2986_v18  ;;  %1166 = vmatpush.msra.mxu1 %v2987_v15  ;;  %v805_v15 = vld [vmem:[#allocation4 + $0x98] sm:$0xff] }
 0x2f6   :  { %1186 = vmatpush.msra.mxu2 %v2988_v34  ;;  %1206 = vmatpush.msra.mxu3 %v2989_v14  ;;  %v2620_v14 = vld [vmem:[#allocation7] sm:$0xff] }
 0x2f7   :  { %1147 = vmatpush.msra.mxu0 %v2990_v13  ;;  %1167 = vmatpush.msra.mxu1 %v2991_v23  ;;  %v3001_v13 = vld [vmem:[#allocation39_spill] sm:$0xff]  ;;  %v802_v23 = vld [vmem:[#allocation4 + $0x80] sm:$0xff]  ;;  %3002 = vst [vmem:[#allocation45_spill] sm:$0xff] %v2620_v14 }
 0x2f8   :  { %1187 = vmatpush.msra.mxu2 %v2992_v11  ;;  %1207 = vmatpush.msra.mxu3 %v2993_v29  ;;  %v803_v11 = vld [vmem:[#allocation4 + $0x88] sm:$0xff] }
 0x2f9   :  { %1148 = vmatpush.msra.mxu0 %v2994_v24  ;;  %1168 = vmatpush.msra.mxu1 %v2995_v22  ;;  %v806_v24 = vadd.f32 %v2620_v14, %v802_v23  ;;  %v2623_v29 = vld [vmem:[#allocation7 + $0x8] sm:$0xff] }
 0x2fa   :  { %1188 = vmatpush.msra.mxu2 %v2996_v12  ;;  %1208 = vmatpush.msra.mxu3 %v2997_v25  ;;  %3003 = vst [vmem:[#allocation40_spill] sm:$0xff] %v2623_v29  ;;  %v807_v12 = vadd.f32 %v2623_v29, %v803_v11  ;;  %v804_v29 = vld [vmem:[#allocation4 + $0x90] sm:$0xff] }
 0x2fb   :  { %1149 = vmatpush.msra.mxu0 %v2998_v16  ;;  %1169 = vmatpush.msra.mxu1 %v2999_v26 }
 0x2fc   :  { %1189 = vmatpush.msra.mxu2 %v3000_v51  ;;  %1209 = vmatpush.msra.mxu3 %v3001_v13  ;;  %v2626_v51 = vld [vmem:[#allocation7 + $0x18] sm:$0xff] }
 0x2fd   :  { %3004 = vst [vmem:[#allocation17_spill] sm:$0xff] %v2626_v51  ;;  %v809_v13 = vadd.f32 %v2626_v51, %v805_v15 }
 0x358   :  { %v827_v22 = vpop.f32.mrf.mxu0  ;;  %v847_v25 = vpop.f32.mrf.mxu1 }
 0x359   :  { %v890_v34 = vadd.f32 %v827_v22, %v806_v24  ;;  %v891_v16 = vadd.f32 %v847_v25, %v807_v12  ;;  %v2629_v24 = vld [vmem:[#allocation7 + $0x10] sm:$0xff] }
 0x35a   :  { %3005 = vst [vmem:[#allocation46_spill] sm:$0xff] %v2629_v24 }
 0x35b   :  { %v1480_v26 = vmul.f32 -1.442695, %v890_v34  ;;  %v1481_v18 = vmul.f32 -1.442695, %v891_v16  ;;  %v808_v34 = vadd.f32 %v2629_v24, %v804_v29 }
 0x35d   :  { %1567 = vpow2.f32 %v1480_v26 }
 0x35e   :  { %1569 = vpow2.f32 %v1481_v18 }
 0x35f   :  { %v887_v21 = vpop.f32.mrf.mxu3  ;;  %v867_v22 = vpop.f32.mrf.mxu2 }
 0x360   :  { %v893_v19 = vadd.f32 %v887_v21, %v809_v13  ;;  %v892_v18 = vadd.f32 %v867_v22, %v808_v34 }
 0x362   :  { %v1482_v23 = vmul.f32 -1.442695, %v893_v19 }
 0x363   :  { %v1568_v14 = vpop.eup %1567 }
 0x364   :  { %v1570_v31 = vpop.eup %1569  ;;  %v897_v28 = vadd.f32 1.0, %v1568_v14  ;;  %1571 = vpow2.f32 %v1482_v23 }
 0x365   :  { %v916_v11 = vadd.f32 1.0, %v1570_v31 }
 0x366   :  { %1573 = vrcp.f32 %v897_v28  ;;  %v909_v26 = vand.u32 2147483648, %v897_v28  ;;  %v907_v51 = vand.u32 2147483647, %v897_v28  ;;  %vm903_vm2 = vweird.f32 %v897_v28 }
 0x367   :  { %1575 = vrcp.f32 %v916_v11  ;;  %v928_v31 = vand.u32 2147483648, %v916_v11  ;;  %v926_v29 = vand.u32 2147483647, %v916_v11  ;;  %vm922_vm3 = vweird.f32 %v916_v11 }
 0x368   :  { %v910_v34 = vor.u32 1.1754944e-38, %v909_v26  ;;  %vm908_vm6 = vcmp.eq.f32.partialorder %v907_v51, 8.507059e+37 }
 0x369   :  { %vm927_vm7 = vcmp.eq.f32.partialorder %v926_v29, 8.507059e+37 }
 0x36a   :  { %v1572_v12 = vpop.eup %1571 }
 0x36b   :  { %v936_v15 = vadd.f32 1.0, %v1572_v12 }
 0x36c   :  { %v1574_v25 = vpop.eup %1573 }
 0x36d   :  { %v1576_v16 = vpop.eup %1575  ;;  %v899_v21 = vmul.f32 %v1574_v25, %v897_v28  ;;  %1577 = vrcp.f32 %v936_v15  ;;  %vm904_vm0 = vweird.f32 %v1574_v25  ;;  %vm942_vm9 = vweird.f32 %v936_v15 }
 0x36e   :  { %v918_v19 = vmul.f32 %v1576_v16, %v916_v11  ;;  %1579 = vtanh.f32 %v892_v18  ;;  %vm923_vm1 = vweird.f32 %v1576_v16  ;;  %vm905_vm4 = vmor %vm903_vm2, %vm904_vm0 }
 0x36f   :  { %v900_v13 = vsub.f32 1.0, %v899_v21  ;;  %vm924_vm5 = vmor %vm922_vm3, %vm923_vm1  ;;  %v929_v21 = vor.u32 1.1754944e-38, %v928_v31 }
 0x370   :  { %v919_v14 = vsub.f32 1.0, %v918_v19 }
 0x371   :  { %v901_v23 = vmul.f32 %v1574_v25, %v900_v13 }
 0x372   :  { %v920_v27 = vmul.f32 %v1576_v16, %v919_v14 }
 0x373   :  { %v1578_v24 = vpop.eup %1577  ;;  %v902_v17 = vadd.f32 %v1574_v25, %v901_v23 }
 0x374   :  { %v921_v22 = vadd.f32 %v1576_v16, %v920_v27  ;;  %v938_v12 = vmul.f32 %v1578_v24, %v936_v15  ;;  %v1580_v18 = vpop.eup %1579  ;;  %vm943_vm8 = vweird.f32 %v1578_v24  ;;  %v948_v27 = vand.u32 2147483648, %v936_v15 }
 0x375   :  { %v906_v19 = vsel %vm905_vm4, %v1574_v25, %v902_v17  ;;  %v946_v17 = vand.u32 2147483647, %v936_v15  ;;  %vm944_vm10 = vmor %vm942_vm9, %vm943_vm8 }
 0x376   :  { %v911_v9 = vsel %vm908_vm6, %v910_v34, %v906_v19  ;;  %v925_v13 = vsel %vm924_vm5, %v1576_v16, %v921_v22  ;;  %v939_v8 = vsub.f32 1.0, %v938_v12  ;;  %v949_v25 = vor.u32 1.1754944e-38, %v948_v27  ;;  %v966_v12 = vld [vmem:[#allocation4 + $0xb0] sm:$0xff] }
 0x377   :  { %v930_v14 = vsel %vm927_vm7, %v929_v21, %v925_v13  ;;  %v953_v7 = vmul.f32 %v1580_v18, %v911_v9  ;;  %vm947_vm11 = vcmp.eq.f32.partialorder %v946_v17, 8.507059e+37  ;;  %v3035_v21 = vld [vmem:[#allocation46_spill] sm:$0xff] }
 0x378   :  { %v952_v20 = vmul.f32 %v930_v14, %v2553_v10  ;;  %v940_v23 = vmul.f32 %v1578_v24, %v939_v8  ;;  %v970_v19 = vadd.f32 %v3035_v21, %v966_v12 }
 0x37a   :  { %v2633_v28 = vadd.f32 %v953_v7, %v952_v20  ;;  %v941_v11 = vadd.f32 %v1578_v24, %v940_v23  ;;  %v3034_v20 = vld [vmem:[#allocation17_spill] sm:$0xff] }
 0x37c   :  { %1581 = vtanh.f32 %v2633_v28  ;;  %v945_v51 = vsel %vm944_vm10, %v1578_v24, %v941_v11 }
 0x37d   :  { %v950_v26 = vsel %vm947_vm11, %v949_v25, %v945_v51 }
 0x382   :  { %v1582_v16 = vpop.eup %1581 }
 0x383   :  { %v956_v31 = vmul.f32 %v1582_v16, %v950_v26 }
 0x385   :  { %960 = vst [vmem:[#allocation12 + $0x20] sm:$0xff] %v956_v31  ;;  %988 = vmatmul.f32.vlgmr.msrb.gmra.mxu0 %v956_v31  ;;  %1008 = vmatmul.f32.vlgmr.msrb.gmra.mxu1 %v956_v31 }
 0x386   :  { %1028 = vmatmul.f32.vlgmr.msrb.gmra.mxu2 %v956_v31  ;;  %1048 = vmatmul.f32.vlgmr.msrb.gmra.mxu3 %v956_v31 }
 0x387   :  { %1296 = vmatpush.msrb.mxu0 %v2356_v42  ;;  %1316 = vmatpush.msrb.mxu1 %v2359_v30  ;;  %v3006_v42 = vld [vmem:[#allocation25_spill] sm:$0xff]  ;;  %v3007_v30 = vld [vmem:[#allocation18_spill] sm:$0xff] }
 0x388   :  { %1336 = vmatpush.msrb.mxu2 %v2362_v32  ;;  %1356 = vmatpush.msrb.mxu3 %v2365_v35  ;;  %v3008_v32 = vld [vmem:[#allocation33_spill] sm:$0xff]  ;;  %v3009_v35 = vld [vmem:[#allocation19_spill] sm:$0xff] }
 0x389   :  { %1297 = vmatpush.msrb.mxu0 %v2368_v39  ;;  %1317 = vmatpush.msrb.mxu1 %v2371_v44  ;;  %v3010_v39 = vld [vmem:[#allocation20_spill] sm:$0xff]  ;;  %v3011_v44 = vld [vmem:[#allocation21_spill] sm:$0xff] }
 0x38a   :  { %1337 = vmatpush.msrb.mxu2 %v2374_v48  ;;  %1357 = vmatpush.msrb.mxu3 %v2377_v59  ;;  %v3012_v48 = vld [vmem:[#allocation37_spill] sm:$0xff]  ;;  %v3013_v59 = vld [vmem:[#allocation22_spill] sm:$0xff] }
 0x38b   :  { %1298 = vmatpush.msrb.mxu0 %v2380_v50  ;;  %1318 = vmatpush.msrb.mxu1 %v2383_v33  ;;  %v3014_v50 = vld [vmem:[#allocation23_spill] sm:$0xff]  ;;  %v3015_v33 = vld [vmem:[#allocation24_spill] sm:$0xff] }
 0x38c   :  { %1338 = vmatpush.msrb.mxu2 %v2386_v36  ;;  %1358 = vmatpush.msrb.mxu3 %v2389_v52  ;;  %v3016_v36 = vld [vmem:[#allocation41_spill] sm:$0xff]  ;;  %v3017_v52 = vld [vmem:[#allocation26_spill] sm:$0xff] }
 0x38d   :  { %1299 = vmatpush.msrb.mxu0 %v2392_v54  ;;  %1319 = vmatpush.msrb.mxu1 %v2395_v60  ;;  %v3018_v54 = vld [vmem:[#allocation27_spill] sm:$0xff]  ;;  %v3019_v60 = vld [vmem:[#allocation28_spill] sm:$0xff] }
 0x38e   :  { %1339 = vmatpush.msrb.mxu2 %v2398_v40  ;;  %1359 = vmatpush.msrb.mxu3 %v2401_v47  ;;  %v3020_v40 = vld [vmem:[#allocation42_spill] sm:$0xff]  ;;  %v3021_v47 = vld [vmem:[#allocation29_spill] sm:$0xff] }
 0x38f   :  { %1300 = vmatpush.msrb.mxu0 %v2404_v61  ;;  %1320 = vmatpush.msrb.mxu1 %v2407_v57  ;;  %v3022_v61 = vld [vmem:[#allocation30_spill] sm:$0xff]  ;;  %v3023_v57 = vld [vmem:[#allocation31_spill] sm:$0xff] }
 0x390   :  { %1340 = vmatpush.msrb.mxu2 %v2410_v58  ;;  %1360 = vmatpush.msrb.mxu3 %v2413_v55  ;;  %v3024_v58 = vld [vmem:[#allocation43_spill] sm:$0xff]  ;;  %v3025_v55 = vld [vmem:[#allocation32_spill] sm:$0xff] }
 0x391   :  { %1301 = vmatpush.msrb.mxu0 %v2416_v49  ;;  %1321 = vmatpush.msrb.mxu1 %v2419_v46  ;;  %v3026_v49 = vld [vmem:[#allocation34_spill] sm:$0xff]  ;;  %v3027_v46 = vld [vmem:[#allocation35_spill] sm:$0xff] }
 0x392   :  { %1341 = vmatpush.msrb.mxu2 %v2422_v37  ;;  %1361 = vmatpush.msrb.mxu3 %v2425_v63  ;;  %v3028_v37 = vld [vmem:[#allocation44_spill] sm:$0xff] }
 0x393   :  { %1302 = vmatpush.msrb.mxu0 %v2428_v56  ;;  %1322 = vmatpush.msrb.mxu1 %v2431_v62  ;;  %v3029_v63 = vld [vmem:[#allocation36_spill] sm:$0xff]  ;;  %v3030_v56 = vld [vmem:[#allocation38_spill] sm:$0xff]  ;;  %v3031_v62 = vld [vmem:[#allocation39_spill] sm:$0xff] }
 0x394   :  { %1342 = vmatpush.msrb.mxu2 %v2434_v0  ;;  %1362 = vmatpush.msrb.mxu3 %v2437_v45  ;;  %v964_v0 = vld [vmem:[#allocation4 + $0xa0] sm:$0xff]  ;;  %v965_v45 = vld [vmem:[#allocation4 + $0xa8] sm:$0xff] }
 0x395   :  { %1303 = vmatpush.msrb.mxu0 %v2440_v38  ;;  %1323 = vmatpush.msrb.mxu1 %v2443_v53  ;;  %v3032_v38 = vld [vmem:[#allocation45_spill] sm:$0xff] }
 0x396   :  { %1343 = vmatpush.msrb.mxu2 %v2446_v41  ;;  %1363 = vmatpush.msrb.mxu3 %v2449_v43  ;;  %v968_v53 = vadd.f32 %v3032_v38, %v964_v0  ;;  %v3033_v41 = vld [vmem:[#allocation40_spill] sm:$0xff] }
 0x397   :  { %1304 = vmatpush.msrb.mxu0 %v2452_v1  ;;  %1324 = vmatpush.msrb.mxu1 %v2455_v2  ;;  %v969_v43 = vadd.f32 %v3033_v41, %v965_v45 }
 0x398   :  { %1344 = vmatpush.msrb.mxu2 %v2458_v3  ;;  %1364 = vmatpush.msrb.mxu3 %v2461_v4 }
 0x399   :  { %1305 = vmatpush.msrb.mxu0 %v2464_v5  ;;  %1325 = vmatpush.msrb.mxu1 %v2467_v6  ;;  %v967_v5 = vld [vmem:[#allocation4 + $0xb8] sm:$0xff] }
 0x39a   :  { %1345 = vmatpush.msrb.mxu2 %v3006_v42  ;;  %1365 = vmatpush.msrb.mxu3 %v3007_v30  ;;  %v971_v7 = vadd.f32 %v3034_v20, %v967_v5 }
 0x39b   :  { %1306 = vmatpush.msrb.mxu0 %v3008_v32  ;;  %1326 = vmatpush.msrb.mxu1 %v3009_v35 }
 0x39c   :  { %1346 = vmatpush.msrb.mxu2 %v3010_v39  ;;  %1366 = vmatpush.msrb.mxu3 %v3011_v44 }
 0x39d   :  { %1307 = vmatpush.msrb.mxu0 %v3012_v48  ;;  %1327 = vmatpush.msrb.mxu1 %v3013_v59 }
 0x39e   :  { %1347 = vmatpush.msrb.mxu2 %v3014_v50  ;;  %1367 = vmatpush.msrb.mxu3 %v3015_v33 }
 0x39f   :  { %1308 = vmatpush.msrb.mxu0 %v3016_v36  ;;  %1328 = vmatpush.msrb.mxu1 %v3017_v52 }
 0x3a0   :  { %1348 = vmatpush.msrb.mxu2 %v3018_v54  ;;  %1368 = vmatpush.msrb.mxu3 %v3019_v60 }
 0x3a1   :  { %1309 = vmatpush.msrb.mxu0 %v3020_v40  ;;  %1329 = vmatpush.msrb.mxu1 %v3021_v47 }
 0x3a2   :  { %1349 = vmatpush.msrb.mxu2 %v3022_v61  ;;  %1369 = vmatpush.msrb.mxu3 %v3023_v57 }
 0x3a3   :  { %1310 = vmatpush.msrb.mxu0 %v3024_v58  ;;  %1330 = vmatpush.msrb.mxu1 %v3025_v55 }
 0x3a4   :  { %1350 = vmatpush.msrb.mxu2 %v3026_v49  ;;  %1370 = vmatpush.msrb.mxu3 %v3027_v46 }
 0x3a5   :  { %1311 = vmatpush.msrb.mxu0 %v3028_v37  ;;  %1331 = vmatpush.msrb.mxu1 %v3029_v63 }
 0x3a6   :  { %1351 = vmatpush.msrb.mxu2 %v3030_v56  ;;  %1371 = vmatpush.msrb.mxu3 %v3031_v62 }
 0x402   :  { %v989_v1 = vpop.f32.mrf.mxu0  ;;  %v1009_v2 = vpop.f32.mrf.mxu1 }
 0x403   :  { %v1052_v3 = vadd.f32 %v989_v1, %v968_v53  ;;  %v1053_v4 = vadd.f32 %v1009_v2, %v969_v43  ;;  %v1127_v53 = vld [vmem:[#allocation4 + $0xc8] sm:$0xff] }
 0x404   :  { %v1131_v1 = vadd.f32 %v3033_v41, %v1127_v53 }
 0x405   :  { %v1483_v6 = vmul.f32 -1.442695, %v1052_v3  ;;  %v1484_v10 = vmul.f32 -1.442695, %v1053_v4 }
 0x407   :  { %1583 = vpow2.f32 %v1483_v6  ;;  %v1129_v6 = vld [vmem:[#allocation4 + $0xd8] sm:$0xff] }
 0x408   :  { %1585 = vpow2.f32 %v1484_v10 }
 0x409   :  { %v1049_v8 = vpop.f32.mrf.mxu3  ;;  %v1029_v18 = vpop.f32.mrf.mxu2 }
 0x40a   :  { %v1055_v9 = vadd.f32 %v1049_v8, %v971_v7  ;;  %v1054_v11 = vadd.f32 %v1029_v18, %v970_v19  ;;  %v1133_v8 = vadd.f32 %v3034_v20, %v1129_v6  ;;  %v1128_v19 = vld [vmem:[#allocation4 + $0xd0] sm:$0xff] }
 0x40b   :  { %v1132_v18 = vadd.f32 %v3035_v21, %v1128_v19 }
 0x40c   :  { %v1485_v24 = vmul.f32 -1.442695, %v1055_v9 }
 0x40d   :  { %v1584_v15 = vpop.eup %1583 }
 0x40e   :  { %v1586_v29 = vpop.eup %1585  ;;  %v1059_v34 = vadd.f32 1.0, %v1584_v15  ;;  %1587 = vpow2.f32 %v1485_v24 }
 0x40f   :  { %v1078_v22 = vadd.f32 1.0, %v1586_v29 }
 0x410   :  { %1589 = vrcp.f32 %v1059_v34  ;;  %v1071_v26 = vand.u32 2147483648, %v1059_v34  ;;  %v1069_v30 = vand.u32 2147483647, %v1059_v34  ;;  %vm1065_vm14 = vweird.f32 %v1059_v34 }
 0x411   :  { %1591 = vrcp.f32 %v1078_v22  ;;  %v1090_v31 = vand.u32 2147483648, %v1078_v22  ;;  %v1088_v35 = vand.u32 2147483647, %v1078_v22  ;;  %vm1084_vm15 = vweird.f32 %v1078_v22 }
 0x412   :  { %v1072_v48 = vor.u32 1.1754944e-38, %v1071_v26  ;;  %vm1070_vm2 = vcmp.eq.f32.partialorder %v1069_v30, 8.507059e+37 }
 0x413   :  { %v1091_v33 = vor.u32 1.1754944e-38, %v1090_v31  ;;  %vm1089_vm3 = vcmp.eq.f32.partialorder %v1088_v35, 8.507059e+37 }
 0x414   :  { %v1588_v13 = vpop.eup %1587 }
 0x415   :  { %v1098_v14 = vadd.f32 1.0, %v1588_v13 }
 0x416   :  { %v1590_v23 = vpop.eup %1589 }
 0x417   :  { %v1592_v27 = vpop.eup %1591  ;;  %v1061_v17 = vmul.f32 %v1590_v23, %v1059_v34  ;;  %1593 = vrcp.f32 %v1098_v14  ;;  %vm1066_vm12 = vweird.f32 %v1590_v23  ;;  %v1110_v46 = vand.u32 2147483648, %v1098_v14 }
 0x418   :  { %v1080_v51 = vmul.f32 %v1592_v27, %v1078_v22  ;;  %1595 = vtanh.f32 %v1054_v11  ;;  %vm1085_vm13 = vweird.f32 %v1592_v27  ;;  %vm1067_vm0 = vmor %vm1065_vm14, %vm1066_vm12  ;;  %vm1104_vm5 = vweird.f32 %v1098_v14 }
 0x419   :  { %v1062_v25 = vsub.f32 1.0, %v1061_v17  ;;  %vm1086_vm1 = vmor %vm1084_vm15, %vm1085_vm13  ;;  %v1108_v37 = vand.u32 2147483647, %v1098_v14  ;;  %v1111_v56 = vor.u32 1.1754944e-38, %v1110_v46 }
 0x41a   :  { %v1081_v16 = vsub.f32 1.0, %v1080_v51 }
 0x41b   :  { %v1063_v42 = vmul.f32 %v1590_v23, %v1062_v25  ;;  %vm1109_vm7 = vcmp.eq.f32.partialorder %v1108_v37, 8.507059e+37 }
 0x41c   :  { %v1082_v32 = vmul.f32 %v1592_v27, %v1081_v16 }
 0x41d   :  { %v1594_v39 = vpop.eup %1593  ;;  %v1064_v44 = vadd.f32 %v1590_v23, %v1063_v42 }
 0x41e   :  { %v1083_v59 = vadd.f32 %v1592_v27, %v1082_v32  ;;  %v1100_v50 = vmul.f32 %v1594_v39, %v1098_v14  ;;  %v1596_v52 = vpop.eup %1595  ;;  %vm1105_vm4 = vweird.f32 %v1594_v39 }
 0x41f   :  { %v1068_v36 = vsel %vm1067_vm0, %v1590_v23, %v1064_v44  ;;  %vm1106_vm6 = vmor %vm1104_vm5, %vm1105_vm4 }
 0x420   :  { %v1073_v54 = vsel %vm1070_vm2, %v1072_v48, %v1068_v36  ;;  %v1087_v60 = vsel %vm1086_vm1, %v1592_v27, %v1083_v59  ;;  %v1101_v40 = vsub.f32 1.0, %v1100_v50 }
 0x421   :  { %v1092_v47 = vsel %vm1089_vm3, %v1091_v33, %v1087_v60  ;;  %v1115_v61 = vmul.f32 %v1596_v52, %v1073_v54 }
 0x422   :  { %v1114_v57 = vmul.f32 %v1092_v47, %v2633_v28  ;;  %v1102_v58 = vmul.f32 %v1594_v39, %v1101_v40  ;;  %v1126_v28 = vld [vmem:[#allocation4 + $0xc0] sm:$0xff] }
 0x423   :  { %v1130_v43 = vadd.f32 %v3032_v38, %v1126_v28 }
 0x424   :  { %v2705_v55 = vadd.f32 %v1115_v61, %v1114_v57  ;;  %v1103_v49 = vadd.f32 %v1594_v39, %v1102_v58 }
 0x426   :  { %1597 = vtanh.f32 %v2705_v55  ;;  %v1107_v63 = vsel %vm1106_vm6, %v1594_v39, %v1103_v49 }
 0x427   :  { %v1112_v0 = vsel %vm1109_vm7, %v1111_v56, %v1107_v63 }
 0x42c   :  { %v1598_v62 = vpop.eup %1597 }
 0x42d   :  { %v1118_v45 = vmul.f32 %v1598_v62, %v1112_v0 }
 0x42f   :  { %1122 = vst [vmem:[#allocation12 + $0x28] sm:$0xff] %v1118_v45  ;;  %1150 = vmatmul.f32.vlgmr.msra.gmra.mxu0 %v1118_v45  ;;  %1170 = vmatmul.f32.vlgmr.msra.gmra.mxu1 %v1118_v45 }
 0x430   :  { %1190 = vmatmul.f32.vlgmr.msra.gmra.mxu2 %v1118_v45  ;;  %1210 = vmatmul.f32.vlgmr.msra.gmra.mxu3 %v1118_v45 }
 0x4ac   :  { %v1151_v2 = vpop.f32.mrf.mxu0  ;;  %v1171_v3 = vpop.f32.mrf.mxu1 }
 0x4ad   :  { %v1214_v4 = vadd.f32 %v1151_v2, %v1130_v43  ;;  %v1215_v5 = vadd.f32 %v1171_v3, %v1131_v1  ;;  %v1289_v43 = vld [vmem:[#allocation4 + $0xe8] sm:$0xff] }
 0x4ae   :  { %v1293_v2 = vadd.f32 %v3033_v41, %v1289_v43  ;;  %v1290_v41 = vld [vmem:[#allocation4 + $0xf0] sm:$0xff] }
 0x4af   :  { %v1486_v10 = vmul.f32 -1.442695, %v1214_v4  ;;  %v1487_v7 = vmul.f32 -1.442695, %v1215_v5  ;;  %v1294_v19 = vadd.f32 %v3035_v21, %v1290_v41 }
 0x4b1   :  { %1599 = vpow2.f32 %v1486_v10  ;;  %v1291_v10 = vld [vmem:[#allocation4 + $0xf8] sm:$0xff] }
 0x4b2   :  { %1601 = vpow2.f32 %v1487_v7 }
 0x4b3   :  { %v1211_v9 = vpop.f32.mrf.mxu3  ;;  %v1191_v13 = vpop.f32.mrf.mxu2 }
 0x4b4   :  { %v1217_v24 = vadd.f32 %v1211_v9, %v1133_v8  ;;  %v1216_v27 = vadd.f32 %v1191_v13, %v1132_v18  ;;  %v1295_v9 = vadd.f32 %v3034_v20, %v1291_v10 }
 0x4b6   :  { %v1488_v15 = vmul.f32 -1.442695, %v1217_v24 }
 0x4b7   :  { %v1600_v29 = vpop.eup %1599 }
 0x4b8   :  { %v1602_v34 = vpop.eup %1601  ;;  %v1221_v22 = vadd.f32 1.0, %v1600_v29  ;;  %1603 = vpow2.f32 %v1488_v15 }
 0x4b9   :  { %v1240_v12 = vadd.f32 1.0, %v1602_v34 }
 0x4ba   :  { %1605 = vrcp.f32 %v1221_v22  ;;  %v1233_v31 = vand.u32 2147483648, %v1221_v22  ;;  %v1231_v32 = vand.u32 2147483647, %v1221_v22  ;;  %vm1227_vm10 = vweird.f32 %v1221_v22 }
 0x4bb   :  { %1607 = vrcp.f32 %v1240_v12  ;;  %v1252_v42 = vand.u32 2147483648, %v1240_v12  ;;  %v1250_v39 = vand.u32 2147483647, %v1240_v12  ;;  %vm1246_vm11 = vweird.f32 %v1240_v12 }
 0x4bc   :  { %v1234_v59 = vor.u32 1.1754944e-38, %v1233_v31  ;;  %vm1232_vm14 = vcmp.eq.f32.partialorder %v1231_v32, 8.507059e+37 }
 0x4bd   :  { %v1253_v36 = vor.u32 1.1754944e-38, %v1252_v42  ;;  %vm1251_vm15 = vcmp.eq.f32.partialorder %v1250_v39, 8.507059e+37 }
 0x4be   :  { %v1604_v14 = vpop.eup %1603 }
 0x4bf   :  { %v1260_v23 = vadd.f32 1.0, %v1604_v14 }
 0x4c0   :  { %v1606_v11 = vpop.eup %1605 }
 0x4c1   :  { %v1608_v17 = vpop.eup %1607  ;;  %v1223_v51 = vmul.f32 %v1606_v11, %v1221_v22  ;;  %1609 = vrcp.f32 %v1260_v23  ;;  %vm1228_vm8 = vweird.f32 %v1606_v11  ;;  %v1272_v63 = vand.u32 2147483648, %v1260_v23 }
 0x4c2   :  { %v1242_v25 = vmul.f32 %v1608_v17, %v1240_v12  ;;  %1611 = vtanh.f32 %v1216_v27  ;;  %vm1247_vm9 = vweird.f32 %v1608_v17  ;;  %vm1229_vm12 = vmor %vm1227_vm10, %vm1228_vm8  ;;  %vm1266_vm1 = vweird.f32 %v1260_v23 }
 0x4c3   :  { %v1224_v16 = vsub.f32 1.0, %v1223_v51  ;;  %vm1248_vm13 = vmor %vm1246_vm11, %vm1247_vm9  ;;  %v1270_v56 = vand.u32 2147483647, %v1260_v23  ;;  %v1273_v0 = vor.u32 1.1754944e-38, %v1272_v63 }
 0x4c4   :  { %v1243_v26 = vsub.f32 1.0, %v1242_v25 }
 0x4c5   :  { %v1225_v30 = vmul.f32 %v1606_v11, %v1224_v16  ;;  %vm1271_vm3 = vcmp.eq.f32.partialorder %v1270_v56, 8.507059e+37 }
 0x4c6   :  { %v1244_v35 = vmul.f32 %v1608_v17, %v1243_v26 }
 0x4c7   :  { %v1610_v44 = vpop.eup %1609  ;;  %v1226_v48 = vadd.f32 %v1606_v11, %v1225_v30 }
 0x4c8   :  { %v1245_v50 = vadd.f32 %v1608_v17, %v1244_v35  ;;  %v1262_v33 = vmul.f32 %v1610_v44, %v1260_v23  ;;  %v1612_v54 = vpop.eup %1611  ;;  %vm1267_vm0 = vweird.f32 %v1610_v44 }
 0x4c9   :  { %v1230_v52 = vsel %vm1229_vm12, %v1606_v11, %v1226_v48  ;;  %vm1268_vm2 = vmor %vm1266_vm1, %vm1267_vm0 }
 0x4ca   :  { %v1235_v60 = vsel %vm1232_vm14, %v1234_v59, %v1230_v52  ;;  %v1249_v40 = vsel %vm1248_vm13, %v1608_v17, %v1245_v50  ;;  %v1263_v47 = vsub.f32 1.0, %v1262_v33 }
 0x4cb   :  { %v1254_v61 = vsel %vm1251_vm15, %v1253_v36, %v1249_v40  ;;  %v1277_v57 = vmul.f32 %v1612_v54, %v1235_v60 }
 0x4cc   :  { %v1276_v58 = vmul.f32 %v1254_v61, %v2705_v55  ;;  %v1264_v49 = vmul.f32 %v1610_v44, %v1263_v47  ;;  %v1288_v55 = vld [vmem:[#allocation4 + $0xe0] sm:$0xff] }
 0x4cd   :  { %v1292_v1 = vadd.f32 %v3032_v38, %v1288_v55 }
 0x4ce   :  { %v2713_v46 = vadd.f32 %v1277_v57, %v1276_v58  ;;  %v1265_v37 = vadd.f32 %v1610_v44, %v1264_v49 }
 0x4d0   :  { %1613 = vtanh.f32 %v2713_v46  ;;  %v1269_v62 = vsel %vm1268_vm2, %v1610_v44, %v1265_v37 }
 0x4d1   :  { %v1274_v28 = vsel %vm1271_vm3, %v1273_v0, %v1269_v62 }
 0x4d6   :  { %v1614_v45 = vpop.eup %1613 }
 0x4d7   :  { %v1280_v53 = vmul.f32 %v1614_v45, %v1274_v28 }
 0x4d9   :  { %1284 = vst [vmem:[#allocation12 + $0x30] sm:$0xff] %v1280_v53  ;;  %1312 = vmatmul.f32.vlgmr.msrb.gmra.mxu0 %v1280_v53  ;;  %1332 = vmatmul.f32.vlgmr.msrb.gmra.mxu1 %v1280_v53 }
 0x4da   :  { %1352 = vmatmul.f32.vlgmr.msrb.gmra.mxu2 %v1280_v53  ;;  %1372 = vmatmul.f32.vlgmr.msrb.gmra.mxu3 %v1280_v53 }
 0x556   :  { %v1313_v3 = vpop.f32.mrf.mxu0  ;;  %v1333_v4 = vpop.f32.mrf.mxu1 }
 0x557   :  { %v1376_v5 = vadd.f32 %v1313_v3, %v1292_v1  ;;  %v1377_v6 = vadd.f32 %v1333_v4, %v1293_v2 }
 0x559   :  { %v1489_v7 = vmul.f32 -1.442695, %v1376_v5  ;;  %v1490_v8 = vmul.f32 -1.442695, %v1377_v6 }
 0x55b   :  { %1615 = vpow2.f32 %v1489_v7 }
 0x55c   :  { %1617 = vpow2.f32 %v1490_v8 }
 0x55d   :  { %v1373_v24 = vpop.f32.mrf.mxu3  ;;  %v1353_v18 = vpop.f32.mrf.mxu2 }
 0x55e   :  { %v1379_v15 = vadd.f32 %v1373_v24, %v1295_v9  ;;  %v1378_v20 = vadd.f32 %v1353_v18, %v1294_v19 }
 0x560   :  { %v1491_v29 = vmul.f32 -1.442695, %v1379_v15 }
 0x561   :  { %v1616_v34 = vpop.eup %1615 }
 0x562   :  { %v1618_v22 = vpop.eup %1617  ;;  %v1383_v12 = vadd.f32 1.0, %v1616_v34  ;;  %1619 = vpow2.f32 %v1491_v29 }
 0x563   :  { %v1402_v38 = vadd.f32 1.0, %v1618_v22 }
 0x564   :  { %1621 = vrcp.f32 %v1383_v12  ;;  %v1395_v16 = vand.u32 2147483648, %v1383_v12  ;;  %v1393_v42 = vand.u32 2147483647, %v1383_v12  ;;  %vm1389_vm6 = vweird.f32 %v1383_v12 }
 0x565   :  { %1623 = vrcp.f32 %v1402_v38  ;;  %v1414_v26 = vand.u32 2147483648, %v1402_v38  ;;  %v1412_v21 = vand.u32 2147483647, %v1402_v38  ;;  %vm1408_vm7 = vweird.f32 %v1402_v38 }
 0x566   :  { %v1396_v39 = vor.u32 1.1754944e-38, %v1395_v16  ;;  %vm1394_vm10 = vcmp.eq.f32.partialorder %v1393_v42, 8.507059e+37 }
 0x567   :  { %v1415_v59 = vor.u32 1.1754944e-38, %v1414_v26  ;;  %vm1413_vm11 = vcmp.eq.f32.partialorder %v1412_v21, 8.507059e+37 }
 0x568   :  { %v1620_v13 = vpop.eup %1619 }
 0x569   :  { %v1422_v14 = vadd.f32 1.0, %v1620_v13 }
 0x56a   :  { %v1622_v23 = vpop.eup %1621 }
 0x56b   :  { %v1624_v11 = vpop.eup %1623  ;;  %v1385_v27 = vmul.f32 %v1622_v23, %v1383_v12  ;;  %1625 = vrcp.f32 %v1422_v14  ;;  %vm1390_vm4 = vweird.f32 %v1622_v23  ;;  %v1434_v49 = vand.u32 2147483648, %v1422_v14 }
 0x56c   :  { %v1404_v17 = vmul.f32 %v1624_v11, %v1402_v38  ;;  %1627 = vtanh.f32 %v1378_v20  ;;  %vm1409_vm5 = vweird.f32 %v1624_v11  ;;  %vm1391_vm8 = vmor %vm1389_vm6, %vm1390_vm4  ;;  %vm1428_vm13 = vweird.f32 %v1422_v14 }
 0x56d   :  { %v1386_v51 = vsub.f32 1.0, %v1385_v27  ;;  %vm1410_vm9 = vmor %vm1408_vm7, %vm1409_vm5  ;;  %v1432_v37 = vand.u32 2147483647, %v1422_v14  ;;  %v1435_v56 = vor.u32 1.1754944e-38, %v1434_v49 }
 0x56e   :  { %v1405_v25 = vsub.f32 1.0, %v1404_v17 }
 0x56f   :  { %v1387_v31 = vmul.f32 %v1622_v23, %v1386_v51  ;;  %vm1433_vm15 = vcmp.eq.f32.partialorder %v1432_v37, 8.507059e+37 }
 0x570   :  { %v1406_v30 = vmul.f32 %v1624_v11, %v1405_v25 }
 0x571   :  { %v1626_v32 = vpop.eup %1625  ;;  %v1388_v35 = vadd.f32 %v1622_v23, %v1387_v31 }
 0x572   :  { %v1407_v44 = vadd.f32 %v1624_v11, %v1406_v30  ;;  %v1424_v48 = vmul.f32 %v1626_v32, %v1422_v14  ;;  %v1628_v33 = vpop.eup %1627  ;;  %vm1429_vm12 = vweird.f32 %v1626_v32 }
 0x573   :  { %v1392_v50 = vsel %vm1391_vm8, %v1622_v23, %v1388_v35  ;;  %vm1430_vm14 = vmor %vm1428_vm13, %vm1429_vm12 }
 0x574   :  { %v1397_v36 = vsel %vm1394_vm10, %v1396_v39, %v1392_v50  ;;  %v1411_v52 = vsel %vm1410_vm9, %v1624_v11, %v1407_v44  ;;  %v1425_v54 = vsub.f32 1.0, %v1424_v48 }
 0x575   :  { %v1416_v60 = vsel %vm1413_vm11, %v1415_v59, %v1411_v52  ;;  %v1439_v40 = vmul.f32 %v1628_v33, %v1397_v36 }
 0x576   :  { %v1438_v47 = vmul.f32 %v1416_v60, %v2713_v46  ;;  %v1426_v61 = vmul.f32 %v1626_v32, %v1425_v54 }
 0x578   :  { %v1440_v57 = vadd.f32 %v1439_v40, %v1438_v47  ;;  %v1427_v58 = vadd.f32 %v1626_v32, %v1426_v61 }
 0x57a   :  { %1629 = vtanh.f32 %v1440_v57  ;;  %v1431_v63 = vsel %vm1430_vm14, %v1626_v32, %v1427_v58 }
 0x57b   :  { %v1436_v46 = vsel %vm1433_vm15, %v1435_v56, %v1431_v63 }
 0x580   :  { %v1630_v62 = vpop.eup %1629 }
 0x581   :  { %v1442_v0 = vmul.f32 %v1630_v62, %v1436_v46 }
 0x583   :  { %1446 = vst [vmem:[#allocation12 + $0x38] sm:$0xff] %v1442_v0 }
 0x584   :  { %1459 = dma.vmem_to_hbm [thread:$0]  %s1452_s3, 1024, %s1454_s11, [#allocation6], %s1834_s12, %s1834_s12, %s1835_s13  }
 0x585   :  { %1825 = dma.done.wait [#allocation6], 1024  }
 0x586   :  { %1826 = vsyncadd [#allocation6], 4294966272 }
 0x587   :  { %1464 = vsyncpa [#allocation5], 1 }
 0x588   :  { %1465 = vsyncpa [#allocation8], 1 }
 0x589   :  { %1466 = vsyncpa [#allocation11], 1 }
 0x58a   :  { %1467 = vsyncpa [#allocation6], 1 }

</bundles_post_ra>
